<compile_context>
chip_gen: v7x
topology: tpu7x:2x2x1
jax: 0.10.0
libtpu: 0.0.40
codegen_flags: <defaults>
</compile_context>

<pallas_src>
import functools

import jax
import jax.numpy as jnp
from jax.experimental import pallas as pl
from jax.experimental.pallas import tpu as pltpu


def _round_up(x, m):
    return (x + m - 1) // m * m


def _tensorcores_per_chip():
    # v7x has 2 TensorCores per chip -> megacore-shard the fused-N axis there.
    # v5e / v6e are single-TC, so splitting N only doubles the grid steps.
    try:
        kind = jax.devices()[0].device_kind.lower()
    except Exception:
        return 1
    return 2 if "v7" in kind else 1


# ----------------------------- Pallas kernels ------------------------------ #

def maxpool2x2_kernel(x_ref, o_ref):
    # x_ref: (2, 2, bb, kt) f32 -- the 2x2 window offsets are the two leading
    # (untiled) dims; K=(c,ho,wo) is lane-dense.  o_ref: (bb, kt) bf16.
    pooled = jnp.maximum(jnp.maximum(x_ref[0, 0], x_ref[0, 1]),
                         jnp.maximum(x_ref[1, 0], x_ref[1, 1]))
    o_ref[...] = pooled.astype(o_ref.dtype)


def fc_heads_kernel(x_ref, w_ref, b_ref, o_ref, acc_ref, *, tk):
    # x: (Bp, Kp) bf16 RESIDENT, w: (tk, tn) bf16 streamed, b: (1, tn) f32.
    # Grid = (N tiles [parallel], K tiles [arbitrary, innermost reduction]).
    k = pl.program_id(1)

    @pl.when(k == 0)
    def _():
        acc_ref[...] = jnp.zeros_like(acc_ref)

    x_blk = x_ref[:, pl.ds(pl.multiple_of(k * tk, tk), tk)]
    acc_ref[...] += jnp.dot(x_blk, w_ref[...],
                            preferred_element_type=jnp.float32)

    @pl.when(k == pl.num_programs(1) - 1)
    def _():
        o_ref[...] = acc_ref[...] + b_ref[...]


# ------------------------------- wrappers ---------------------------------- #

def maxpool2x2_to_activation(feat_nchw):
    """MaxPool2d(2) + NCHW flatten, emitted directly as the (B, K) bf16 FC
    activation matrix with K in native (c, ho, wo) flatten order."""
    B, C, H, W = feat_nchw.shape
    Ho, Wo = H // 2, W // 2
    K = C * Ho * Wo

    # Single XLA rearrangement: 2x2 window offsets to leading (untiled) dims,
    # K kept in PyTorch flatten order -> no weight-row permutation needed and
    # the pooled output IS the FC activation matrix.
    # TODO(synk): if the backbone can emit this layout (or NHWC) directly, this
    # transpose (one HBM round trip over the feature map) disappears.
    x = feat_nchw.reshape(B, C, Ho, 2, Wo, 2)
    x = jnp.transpose(x, (3, 5, 0, 1, 2, 4)).reshape(2, 2, B, K)

    # Block sizes: single grid step when small; tile (B, K) so one f32 input
    # block (4 window offsets * 4 bytes) stays ~<= 4 MB at large batch.
    bb = B if (B <= 8 or B % 8 != 0) else 8
    kt = K
    if 16 * bb * K > 4 * 1024 * 1024:
        for cand in (8192, 4096, 2048, 1024, 512, 256, 128):
            if K % cand == 0 and 16 * bb * cand <= 4 * 1024 * 1024:
                kt = cand
                break

    return pl.pallas_call(
        maxpool2x2_kernel,
        out_shape=jax.ShapeDtypeStruct((B, K), jnp.bfloat16),   # bf16 on store
        grid=(B // bb, K // kt),
        in_specs=[pl.BlockSpec((2, 2, bb, kt), lambda i, j: (0, 0, i, j))],
        out_specs=pl.BlockSpec((bb, kt), lambda i, j: (i, j)),
        compiler_params=pltpu.CompilerParams(
            dimension_semantics=("parallel", "parallel"),
            vmem_limit_bytes=32 * 1024 * 1024),
    )(x)


def fc_heads(x_flat_pad, wt_pad, b_pad, *, tk, tn):
    """Fused fc1|fc2|fc3: (Bp, Kp) @ (Kp, Np) + b.
    Resident activation, K-tiled bf16 weight streaming, f32 accumulator."""
    Bp, Kp = x_flat_pad.shape
    Np = wt_pad.shape[1]
    kernel = functools.partial(fc_heads_kernel, tk=tk)
    return pl.pallas_call(
        kernel,
        out_shape=jax.ShapeDtypeStruct((Bp, Np), jnp.float32),
        grid=(Np // tn, Kp // tk),
        in_specs=[
            pl.BlockSpec((Bp, Kp), lambda j, k: (0, 0)),    # resident x
            pl.BlockSpec((tk, tn), lambda j, k: (k, j)),    # streamed weights
            pl.BlockSpec((1, tn), lambda j, k: (0, j)),     # bias
        ],
        out_specs=pl.BlockSpec((Bp, tn), lambda j, k: (0, j)),
        scratch_shapes=[pltpu.VMEM((Bp, tn), jnp.float32)],
        compiler_params=pltpu.CompilerParams(
            dimension_semantics=("parallel", "arbitrary"),
            vmem_limit_bytes=32 * 1024 * 1024),
    )(x_flat_pad, wt_pad, b_pad)


def pack_fc_params(params, *, tk=4096, tn=None):
    """One-time packing of the three Linear heads (done OUTSIDE the forward):
    fuse along N, pad K/N, cast weights to bf16.  K rows stay in the native
    PyTorch (c, ho, wo) order -- the pooled activation matches directly."""
    wt = jnp.concatenate(
        [params["w1"].T, params["w2"].T, params["w3"].T], axis=1)   # (K, 186)
    K, N = wt.shape
    b = jnp.concatenate([params["b1"], params["b2"], params["b3"]])

    Np = _round_up(N, 128)
    if tn is None:
        tn = 128 if _tensorcores_per_chip() >= 2 else Np            # v7x split
    assert Np % tn == 0

    tk = min(tk, _round_up(K, 128))   # large K tile; capped for toy shapes
    Kp = _round_up(K, tk)

    wt = jnp.pad(wt, ((0, Kp - K), (0, Np - N))).astype(jnp.bfloat16)
    b = jnp.pad(b, (0, Np - N)).astype(jnp.float32)[None, :]        # (1, Np)
    return {
        "wt": wt, "b": b, "tk": tk, "tn": tn, "K": K,
        "splits": (params["w1"].shape[0], params["w2"].shape[0],
                   params["w3"].shape[0]),
    }


def mofishnet150_forward(feat_nchw, packed):
    """pool -> flatten(NCHW) -> fc1/fc2/fc3 (3-tuple), matching
    MoFishnet150.forward on the backbone feature map `feat_nchw` (B,C,H,W)."""
    B = feat_nchw.shape[0]
    act = maxpool2x2_to_activation(feat_nchw)            # (B, K) bf16
    K = act.shape[1]
    assert K == packed["K"]

    Bp = _round_up(B, 8)
    Kp = packed["wt"].shape[0]
    act = jnp.pad(act, ((0, Bp - B), (0, Kp - K)))       # tiny bf16 pad only

    out = fc_heads(act, packed["wt"], packed["b"],
                   tk=packed["tk"], tn=packed["tn"])     # (Bp, Np) f32

    n1, n2, n3 = packed["splits"]
    x1 = out[:B, :n1]
    x2 = out[:B, n1:n1 + n2]
    x3 = out[:B, n1 + n2:n1 + n2 + n3]
    return x1, x2, x3


# --------------------------------- main ------------------------------------ #

if __name__ == "__main__":
    # Small, module-consistent stand-in shapes: backbone feature map (B,C,H,W).
    # (Real fishnet150 gives C*Ho*Wo = 31552; here K = 512*4*4 = 8192 so the
    #  K-tiled weight stream still runs 2 reduction steps at tk=4096.)
    B, C, H, W = 2, 512, 8, 8
    Ho, Wo = H // 2, W // 2
    F = C * Ho * Wo

    key = jax.random.PRNGKey(0)
    k_x, k1, k2, k3, kb1, kb2, kb3 = jax.random.split(key, 7)

    feat = jax.random.normal(k_x, (B, C, H, W), jnp.float32)

    scale = 1.0 / jnp.sqrt(jnp.float32(F))
    params = {
        "w1": jax.random.normal(k1, (11, F), jnp.float32) * scale,
        "b1": jax.random.normal(kb1, (11,), jnp.float32) * scale,
        "w2": jax.random.normal(k2, (168, F), jnp.float32) * scale,
        "b2": jax.random.normal(kb2, (168,), jnp.float32) * scale,
        "w3": jax.random.normal(k3, (7, F), jnp.float32) * scale,
        "b3": jax.random.normal(kb3, (7,), jnp.float32) * scale,
    }

    packed = pack_fc_params(params)

    fwd = jax.jit(functools.partial(mofishnet150_forward, packed=packed))
    x1, x2, x3 = fwd(feat)
    jax.block_until_ready((x1, x2, x3))

    # Pure-JAX f32 reference (MaxPool2d(2) + NCHW flatten + 3 Linear heads).
    pooled_ref = jnp.max(feat.reshape(B, C, Ho, 2, Wo, 2), axis=(3, 5))
    flat_ref = pooled_ref.reshape(B, -1)
    r1 = flat_ref @ params["w1"].T + params["b1"]
    r2 = flat_ref @ params["w2"].T + params["b2"]
    r3 = flat_ref @ params["w3"].T + params["b3"]

    assert x1.shape == (B, 11) and x2.shape == (B, 168) and x3.shape == (B, 7)
    # bf16 weights/activations in the kernel -> loosened tolerance vs f32 ref.
    assert jnp.allclose(x1, r1, atol=5e-2, rtol=5e-2)
    assert jnp.allclose(x2, r2, atol=5e-2, rtol=5e-2)
    assert jnp.allclose(x3, r3, atol=5e-2, rtol=5e-2)

    print("KERNEL_OK")
</pallas_src>

<mosaic_0001>
module attributes {stable_mosaic.version = 11 : i64} {
  func.func @maxpool2x2_kernel(%arg0: i32, %arg1: i32, %arg2: memref<2x2x2x8192xf32, #tpu.memory_space<vmem>>, %arg3: memref<2x8192xbf16, #tpu.memory_space<vmem>>) attributes {dimension_semantics = [#tpu.dimension_semantics<parallel>, #tpu.dimension_semantics<parallel>], iteration_bounds = array<i64: 1, 1>, scalar_prefetch = 0 : i64, scratch_operands = 0 : i64, tpu.core_type = #tpu.core_type<tc>, window_params = [{transform_indices = @transform_0, window_bounds = array<i64: 2, 2, 2, 8192>}, {transform_indices = @transform_1, window_bounds = array<i64: 2, 8192>}]} {
    %c0 = arith.constant 0 : index
    %c0_0 = arith.constant 0 : index
    %c0_1 = arith.constant 0 : index
    %c0_2 = arith.constant 0 : index
    %0 = vector.load %arg2[%c0, %c0_0, %c0_1, %c0_2] : memref<2x2x2x8192xf32, #tpu.memory_space<vmem>>, vector<1x1x2x8192xf32>
    %1 = vector.shape_cast %0 : vector<1x1x2x8192xf32> to vector<2x8192xf32>
    %c0_3 = arith.constant 0 : index
    %c1 = arith.constant 1 : index
    %c0_4 = arith.constant 0 : index
    %c0_5 = arith.constant 0 : index
    %2 = vector.load %arg2[%c0_3, %c1, %c0_4, %c0_5] : memref<2x2x2x8192xf32, #tpu.memory_space<vmem>>, vector<1x1x2x8192xf32>
    %3 = vector.shape_cast %2 : vector<1x1x2x8192xf32> to vector<2x8192xf32>
    %4 = arith.maximumf %1, %3 : vector<2x8192xf32>
    %c1_6 = arith.constant 1 : index
    %c0_7 = arith.constant 0 : index
    %c0_8 = arith.constant 0 : index
    %c0_9 = arith.constant 0 : index
    %5 = vector.load %arg2[%c1_6, %c0_7, %c0_8, %c0_9] : memref<2x2x2x8192xf32, #tpu.memory_space<vmem>>, vector<1x1x2x8192xf32>
    %6 = vector.shape_cast %5 : vector<1x1x2x8192xf32> to vector<2x8192xf32>
    %c1_10 = arith.constant 1 : index
    %c1_11 = arith.constant 1 : index
    %c0_12 = arith.constant 0 : index
    %c0_13 = arith.constant 0 : index
    %7 = vector.load %arg2[%c1_10, %c1_11, %c0_12, %c0_13] : memref<2x2x2x8192xf32, #tpu.memory_space<vmem>>, vector<1x1x2x8192xf32>
    %8 = vector.shape_cast %7 : vector<1x1x2x8192xf32> to vector<2x8192xf32>
    %9 = arith.maximumf %6, %8 : vector<2x8192xf32>
    %10 = arith.maximumf %4, %9 : vector<2x8192xf32>
    %11 = arith.truncf %10 : vector<2x8192xf32> to vector<2x8192xbf16>
    %c0_14 = arith.constant 0 : index
    %c0_15 = arith.constant 0 : index
    %12 = vector.load %arg3[%c0_14, %c0_15] : memref<2x8192xbf16, #tpu.memory_space<vmem>>, vector<2x8192xbf16>
    tpu.vector_store %arg3[%c0_14, %c0_15], %11 {strides = array<i32>} : memref<2x8192xbf16, #tpu.memory_space<vmem>>, vector<2x8192xbf16>,
    return
  }
  func.func @transform_0(%arg0: i32, %arg1: i32) -> (i32, i32, i32, i32) {
    %c0_i32 = arith.constant 0 : i32
    %c0_i32_0 = arith.constant 0 : i32
    %c0_i32_1 = arith.constant 0 : i32
    return %c0_i32, %c0_i32_0, %arg0, %arg1 : i32, i32, i32, i32
  }
  func.func @transform_1(%arg0: i32, %arg1: i32) -> (i32, i32) {
    %c0_i32 = arith.constant 0 : i32
    return %arg0, %arg1 : i32, i32
  }
}

module attributes {stable_mosaic.version = 11 : i64} {
  func.func @fc_heads_kernel(%arg0: i32, %arg1: i32, %arg2: memref<8x8192xbf16, #tpu.memory_space<vmem>>, %arg3: memref<4096x256xbf16, #tpu.memory_space<vmem>>, %arg4: memref<1x256xf32, #tpu.memory_space<vmem>>, %arg5: memref<8x256xf32, #tpu.memory_space<vmem>>, %arg6: memref<8x256xf32, #tpu.memory_space<vmem>>) attributes {dimension_semantics = [#tpu.dimension_semantics<parallel>, #tpu.dimension_semantics<arbitrary>], iteration_bounds = array<i64: 1, 2>, scalar_prefetch = 0 : i64, scratch_operands = 1 : i64, tpu.core_type = #tpu.core_type<tc>, window_params = [{pipeline_mode = #tpu.pipeline_mode<synchronous>, transform_indices = @transform_0, window_bounds = array<i64: 8, 8192>}, {transform_indices = @transform_1, window_bounds = array<i64: 4096, 256>}, {transform_indices = @transform_2, window_bounds = array<i64: 1, 256>}, {transform_indices = @transform_3, window_bounds = array<i64: 8, 256>}]} {
    %c0_i32 = arith.constant 0 : i32
    %0 = arith.cmpi eq, %arg1, %c0_i32 : i32
    %1 = arith.extui %0 : i1 to i32
    %c0_i32_0 = arith.constant 0 : i32
    %2 = arith.cmpi ne, %1, %c0_i32_0 : i32
    scf.if %2 {
      %cst_8 = arith.constant 0.000000e+00 : f32
      %15 = vector.broadcast %cst_8 : f32 to vector<8x256xf32>
      %c0_9 = arith.constant 0 : index
      %c0_10 = arith.constant 0 : index
      %16 = vector.load %arg6[%c0_9, %c0_10] : memref<8x256xf32, #tpu.memory_space<vmem>>, vector<8x256xf32>
      tpu.vector_store %arg6[%c0_9, %c0_10], %15 {strides = array<i32>} : memref<8x256xf32, #tpu.memory_space<vmem>>, vector<8x256xf32>,
    } else {
    }
    %c4096_i32 = arith.constant 4096 : i32
    %3 = arith.muli %arg1, %c4096_i32 : i32
    %4 = tpu.assume_multiple %3, 4096 : i32
    %c0 = arith.constant 0 : index
    %5 = arith.index_cast %4 : i32 to index
    %6 = vector.load %arg2[%c0, %5] : memref<8x8192xbf16, #tpu.memory_space<vmem>>, vector<8x4096xbf16>
    %c0_1 = arith.constant 0 : index
    %c0_2 = arith.constant 0 : index
    %7 = vector.load %arg6[%c0_1, %c0_2] : memref<8x256xf32, #tpu.memory_space<vmem>>, vector<8x256xf32>
    %c0_3 = arith.constant 0 : index
    %c0_4 = arith.constant 0 : index
    %8 = vector.load %arg3[%c0_3, %c0_4] : memref<4096x256xbf16, #tpu.memory_space<vmem>>, vector<4096x256xbf16>
    %cst = arith.constant dense<0.000000e+00> : vector<8x256xf32>
    %9 = tpu.matmul %6, %8, %cst {dimension_numbers = #tpu.dot_dimension_numbers<[1], [0], [0], [1], [0, 0, 1, 1], [], []>} : vector<8x4096xbf16>, vector<4096x256xbf16>, vector<8x256xf32> -> vector<8x256xf32>
    %10 = arith.addf %7, %9 : vector<8x256xf32>
    %c0_5 = arith.constant 0 : index
    %c0_6 = arith.constant 0 : index
    %11 = vector.load %arg6[%c0_5, %c0_6] : memref<8x256xf32, #tpu.memory_space<vmem>>, vector<8x256xf32>
    tpu.vector_store %arg6[%c0_5, %c0_6], %10 {strides = array<i32>} : memref<8x256xf32, #tpu.memory_space<vmem>>, vector<8x256xf32>,
    %c1_i32 = arith.constant 1 : i32
    %12 = arith.cmpi eq, %arg1, %c1_i32 : i32
    %13 = arith.extui %12 : i1 to i32
    %c0_i32_7 = arith.constant 0 : i32
    %14 = arith.cmpi ne, %13, %c0_i32_7 : i32
    scf.if %14 {
      %c0_8 = arith.constant 0 : index
      %c0_9 = arith.constant 0 : index
      %15 = vector.load %arg6[%c0_8, %c0_9] : memref<8x256xf32, #tpu.memory_space<vmem>>, vector<8x256xf32>
      %c0_10 = arith.constant 0 : index
      %c0_11 = arith.constant 0 : index
      %16 = vector.load %arg4[%c0_10, %c0_11] : memref<1x256xf32, #tpu.memory_space<vmem>>, vector<1x256xf32>
      %17 = vector.broadcast %16 : vector<1x256xf32> to vector<8x256xf32>
      %18 = arith.addf %15, %17 : vector<8x256xf32>
      %c0_12 = arith.constant 0 : index
      %c0_13 = arith.constant 0 : index
      %19 = vector.load %arg5[%c0_12, %c0_13] : memref<8x256xf32, #tpu.memory_space<vmem>>, vector<8x256xf32>
      tpu.vector_store %arg5[%c0_12, %c0_13], %18 {strides = array<i32>} : memref<8x256xf32, #tpu.memory_space<vmem>>, vector<8x256xf32>,
    } else {
    }
    return
  }
  func.func @transform_0(%arg0: i32, %arg1: i32) -> (i32, i32) {
    %c0_i32 = arith.constant 0 : i32
    %c0_i32_0 = arith.constant 0 : i32
    %c0_i32_1 = arith.constant 0 : i32
    return %c0_i32, %c0_i32_0 : i32, i32
  }
  func.func @transform_1(%arg0: i32, %arg1: i32) -> (i32, i32) {
    %c0_i32 = arith.constant 0 : i32
    return %arg1, %arg0 : i32, i32
  }
  func.func @transform_2(%arg0: i32, %arg1: i32) -> (i32, i32) {
    %c0_i32 = arith.constant 0 : i32
    %c0_i32_0 = arith.constant 0 : i32
    return %c0_i32, %arg0 : i32, i32
  }
  func.func @transform_3(%arg0: i32, %arg1: i32) -> (i32, i32) {
    %c0_i32 = arith.constant 0 : i32
    %c0_i32_0 = arith.constant 0 : i32
    return %c0_i32, %arg0 : i32, i32
  }
}

</mosaic_0001>

<bundles_post_ra>
// kernel: mofishnet150_forward.2
= control target key start
LH: loop header
LB: loop body
LE: loop exit
PB: predicated region body
PF: predicated region fallthrough
CT: control target
= control target key end

     0   :  { %v143_v0 = vlaneseq  ;;  %v1097_v4 = vmov 1983009808   ;;  %v1098_v6 = vmov 1966171168   ;;  %s1409_s0 = inlined_call_operand.vmem [shape: f32[2,2,2,8192], index: 0, kind: input, shape index: {}]   ;;  %s1410_s1 = inlined_call_operand.vmem [shape: bf16[2,8192], index: 1, kind: output, shape index: {}]  }
   0x1   :  { %v8_v1 = vld [vmem:[%s1409_s0] sm:$0xff]  ;;  %v9_v2 = vld [vmem:[%s1409_s0 + $0x8] sm:$0xff]  ;;  %v141_v5 = vunpack.c.l.s4 %v1097_v4  ;;  %v608_v7 = vunpack.c.l.s4 %v1098_v6  ;;  %v10_v18 = vld [vmem:[%s1409_s0 + $0x10] sm:$0xff] }
   0x2   :  { %v1015_v3 = vld [vmem:[%s1409_s0 + $0x80] sm:$0xff]  ;;  %v1016_v8 = vld [vmem:[%s1409_s0 + $0x88] sm:$0xff]  ;;  %v144_v12 = vshrl.u32 %v143_v0, 7  ;;  %v11_v21 = vld [vmem:[%s1409_s0 + $0x18] sm:$0xff] }
   0x3   :  { %v41_v9 = vmax.f32 %v8_v1, %v1015_v3  ;;  %v1031_v10 = vld [vmem:[%s1409_s0 + $0x100] sm:$0xff]  ;;  %v1032_v11 = vld [vmem:[%s1409_s0 + $0x108] sm:$0xff]  ;;  %v42_v13 = vmax.f32 %v9_v2, %v1016_v8  ;;  %v142_v16 = vunpack.c.0.s8 %v141_v5  ;;  %v609_v17 = vunpack.c.0.s8 %v608_v7  ;;  %v1017_v22 = vld [vmem:[%s1409_s0 + $0x90] sm:$0xff] }
   0x4   :  { %v1047_v14 = vld [vmem:[%s1409_s0 + $0x180] sm:$0xff]  ;;  %v1048_v15 = vld [vmem:[%s1409_s0 + $0x188] sm:$0xff]  ;;  %v1018_v23 = vld [vmem:[%s1409_s0 + $0x98] sm:$0xff]  ;;  %v43_v25 = vmax.f32 %v10_v18, %v1017_v22 }
   0x5   :  { %v91_v19 = vmax.f32 %v1031_v10, %v1047_v14  ;;  %v92_v20 = vmax.f32 %v1032_v11, %v1048_v15  ;;  %v1145_v24 = vsub.s32 %v142_v16, %v144_v12  ;;  %v44_v26 = vmax.f32 %v11_v21, %v1018_v23  ;;  %v1033_v27 = vld [vmem:[%s1409_s0 + $0x110] sm:$0xff]  ;;  %v1034_v28 = vld [vmem:[%s1409_s0 + $0x118] sm:$0xff]  ;;  %v12_v34 = vld [vmem:[%s1409_s0 + $0x20] sm:$0xff] }
   0x6   :  { %v1049_v29 = vld [vmem:[%s1409_s0 + $0x190] sm:$0xff]  ;;  %v1050_v32 = vld [vmem:[%s1409_s0 + $0x198] sm:$0xff]  ;;  %v13_v35 = vld [vmem:[%s1409_s0 + $0x28] sm:$0xff]  ;;  %v1165_v36 = vsub.s32 %v609_v17, %v144_v12 }
   0x7   :  { %v107_v30 = vmax.f32 %v41_v9, %v91_v19  ;;  %v108_v31 = vmax.f32 %v42_v13, %v92_v20  ;;  %v93_v33 = vmax.f32 %v1033_v27, %v1049_v29  ;;  %v94_v37 = vmax.f32 %v1034_v28, %v1050_v32  ;;  %v1019_v38 = vld [vmem:[%s1409_s0 + $0xa0] sm:$0xff]  ;;  %v1020_v39 = vld [vmem:[%s1409_s0 + $0xa8] sm:$0xff]  ;;  %v14_v12 = vld [vmem:[%s1409_s0 + $0x30] sm:$0xff] }
   0x8   :  { %v45_v46 = vmax.f32 %v12_v34, %v1019_v38  ;;  %v46_v47 = vmax.f32 %v13_v35, %v1020_v39  ;;  %v1035_v60 = vld [vmem:[%s1409_s0 + $0x120] sm:$0xff]  ;;  %v1036_v1 = vld [vmem:[%s1409_s0 + $0x128] sm:$0xff]  ;;  %v15_v17 = vld [vmem:[%s1409_s0 + $0x38] sm:$0xff] }
   0x9   :  { %v139_v40 = vcombine.high %v107_v30, %v107_v30  ;;  %v146_v41 = vrot.slane %v107_v30, %v1145_v24  ;;  %v156_v42 = vcombine.high %v108_v31, %v108_v31  ;;  %v163_v43 = vrot.slane %v108_v31, %v1145_v24  ;;  %v1051_v2 = vld [vmem:[%s1409_s0 + $0x1a0] sm:$0xff]  ;;  %v1052_v3 = vld [vmem:[%s1409_s0 + $0x1a8] sm:$0xff]  ;;  %v1021_v18 = vld [vmem:[%s1409_s0 + $0xb0] sm:$0xff] }
   0xa   :  { %v109_v44 = vmax.f32 %v43_v25, %v93_v33  ;;  %v110_v45 = vmax.f32 %v44_v26, %v94_v37  ;;  %v95_v15 = vmax.f32 %v1035_v60, %v1051_v2  ;;  %v96_v16 = vmax.f32 %v1036_v1, %v1052_v3  ;;  %v1022_v19 = vld [vmem:[%s1409_s0 + $0xb8] sm:$0xff]  ;;  %v1037_v33 = vld [vmem:[%s1409_s0 + $0x130] sm:$0xff]  ;;  %v17_v60 = vld [vmem:[%s1409_s0 + $0x48] sm:$0xff] }
   0xb   :  { %v153_v48 = vrot.slane %v139_v40, %v1145_v24  ;;  %v154_v49 = vcombine.high %v146_v41, %v146_v41  ;;  %v170_v50 = vrot.slane %v156_v42, %v1145_v24  ;;  %v171_v51 = vcombine.high %v163_v43, %v163_v43  ;;  %v1053_v34 = vld [vmem:[%s1409_s0 + $0x1b0] sm:$0xff]  ;;  %v1039_v2 = vld [vmem:[%s1409_s0 + $0x140] sm:$0xff] }
   0xc   :  { %v173_v52 = vcombine.high %v109_v44, %v109_v44  ;;  %v180_v53 = vrot.slane %v109_v44, %v1145_v24  ;;  %v190_v54 = vcombine.high %v110_v45, %v110_v45  ;;  %v197_v55 = vrot.slane %v110_v45, %v1145_v24  ;;  %v1038_v44 = vld [vmem:[%s1409_s0 + $0x138] sm:$0xff] }
   0xd   :  { %v155_v56 = vcombine.high %v153_v48, %v153_v48  ;;  %v172_v57 = vcombine.high %v170_v50, %v170_v50  ;;  %v1063_v58 = vpack.c.bf16 %v154_v49, %v146_v41  ;;  %v1065_v59 = vpack.c.bf16 %v171_v51, %v163_v43  ;;  %v1054_v45 = vld [vmem:[%s1409_s0 + $0x1b8] sm:$0xff]  ;;  %v1023_v51 = vld [vmem:[%s1409_s0 + $0xc0] sm:$0xff] }
   0xe   :  { %v187_v61 = vrot.slane %v173_v52, %v1145_v24  ;;  %v188_v62 = vcombine.high %v180_v53, %v180_v53  ;;  %v204_v63 = vrot.slane %v190_v54, %v1145_v24  ;;  %v205_v0 = vcombine.high %v197_v55, %v197_v55 }
   0xf   :  { %v1064_v4 = vpack.c.bf16 %v155_v56, %v153_v48  ;;  %v1066_v5 = vpack.c.bf16 %v172_v57, %v170_v50  ;;  %v613_v6 = vrot.slane %v1063_v58, %v1165_v36  ;;  %v627_v7 = vrot.slane %v1065_v59, %v1165_v36  ;;  %v16_v50 = vld [vmem:[%s1409_s0 + $0x40] sm:$0xff] }
  0x10   :  { %v189_v8 = vcombine.high %v187_v61, %v187_v61  ;;  %v206_v9 = vcombine.high %v204_v63, %v204_v63  ;;  %v1067_v10 = vpack.c.bf16 %v188_v62, %v180_v53  ;;  %v1069_v11 = vpack.c.bf16 %v205_v0, %v197_v55 }
  0x11   :  { %v620_v13 = vrot.slane %v1064_v4, %v1165_v36  ;;  %v634_v14 = vrot.slane %v1066_v5, %v1165_v36  ;;  %v111_v27 = vmax.f32 %v45_v46, %v95_v15  ;;  %v112_v28 = vmax.f32 %v46_v47, %v96_v16 }
  0x12   :  { %v1068_v20 = vpack.c.bf16 %v189_v8, %v187_v61  ;;  %v1070_v21 = vpack.c.bf16 %v206_v9, %v204_v63  ;;  %v662_v22 = vrot.slane %v1067_v10, %v1165_v36  ;;  %v676_v23 = vrot.slane %v1069_v11, %v1165_v36  ;;  %v1024_v61 = vld [vmem:[%s1409_s0 + $0xc8] sm:$0xff]  ;;  %v1055_v8 = vld [vmem:[%s1409_s0 + $0x1c0] sm:$0xff] }
  0x13   :  { %v635_v25 = vcombine.low %v613_v6, %v620_v13  ;;  %v636_v26 = vcombine.low %v627_v7, %v634_v14  ;;  %v47_v31 = vmax.f32 %v14_v12, %v1021_v18  ;;  %v48_v32 = vmax.f32 %v15_v17, %v1022_v19  ;;  %v1040_v7 = vld [vmem:[%s1409_s0 + $0x148] sm:$0xff] }
  0x14   :  { %v669_v29 = vrot.slane %v1068_v20, %v1165_v36  ;;  %v683_v30 = vrot.slane %v1070_v21, %v1165_v36  ;;  %v207_v38 = vcombine.high %v111_v27, %v111_v27  ;;  %v214_v39 = vrot.slane %v111_v27, %v1145_v24  ;;  %v1056_v9 = vld [vmem:[%s1409_s0 + $0x1c8] sm:$0xff] }
  0x15   :  { %v643_v35 = vrot.slane %v635_v25, %v1165_v36  ;;  %v650_v37 = vrot.slane %v636_v26, %v1165_v36  ;;  %v224_v42 = vcombine.high %v112_v28, %v112_v28  ;;  %v231_v43 = vrot.slane %v112_v28, %v1145_v24 }
  0x16   :  { %v684_v40 = vcombine.low %v662_v22, %v669_v29  ;;  %v685_v41 = vcombine.low %v676_v23, %v683_v30  ;;  %v221_v47 = vrot.slane %v207_v38, %v1145_v24  ;;  %v222_v48 = vcombine.high %v214_v39, %v214_v39 }
  0x17   :  { %v651_v46 = vcombine.low %v643_v35, %v650_v37  ;;  %v97_v49 = vmax.f32 %v1037_v33, %v1053_v34  ;;  %v238_v54 = vrot.slane %v224_v42, %v1145_v24  ;;  %v239_v55 = vcombine.high %v231_v43, %v231_v43 }
  0x18   :  { %v692_v52 = vrot.slane %v684_v40, %v1165_v36  ;;  %v699_v53 = vrot.slane %v685_v41, %v1165_v36  ;;  %v223_v56 = vcombine.high %v221_v47, %v221_v47  ;;  %v1071_v57 = vpack.c.bf16 %v222_v48, %v214_v39  ;;  %v18_v40 = vld [vmem:[%s1409_s0 + $0x50] sm:$0xff] }
  0x19   :  { %1003 = vst [vmem:[%s1410_s1] sm:$0xff] %v651_v46  ;;  %v98_v58 = vmax.f32 %v1038_v44, %v1054_v45  ;;  %v113_v59 = vmax.f32 %v47_v31, %v97_v49  ;;  %v240_v63 = vcombine.high %v238_v54, %v238_v54  ;;  %v1073_v0 = vpack.c.bf16 %v239_v55, %v231_v43  ;;  %v1025_v41 = vld [vmem:[%s1409_s0 + $0xd0] sm:$0xff]  ;;  %v19_v46 = vld [vmem:[%s1409_s0 + $0x58] sm:$0xff] }
  0x1a   :  { %v700_v62 = vcombine.low %v692_v52, %v699_v53  ;;  %v49_v1 = vmax.f32 %v16_v50, %v1023_v51  ;;  %v1072_v3 = vpack.c.bf16 %v223_v56, %v221_v47  ;;  %v711_v4 = vrot.slane %v1071_v57, %v1165_v36  ;;  %v1026_v47 = vld [vmem:[%s1409_s0 + $0xd8] sm:$0xff]  ;;  %v1041_v52 = vld [vmem:[%s1409_s0 + $0x150] sm:$0xff] }
  0x1b   :  { %v114_v5 = vmax.f32 %v48_v32, %v98_v58  ;;  %v241_v6 = vcombine.high %v113_v59, %v113_v59  ;;  %v1074_v10 = vpack.c.bf16 %v240_v63, %v238_v54  ;;  %v725_v11 = vrot.slane %v1073_v0, %v1165_v36  ;;  %v1057_v53 = vld [vmem:[%s1409_s0 + $0x1d0] sm:$0xff]  ;;  %v1042_v58 = vld [vmem:[%s1409_s0 + $0x158] sm:$0xff]  ;;  %v20_v0 = vld [vmem:[%s1409_s0 + $0x60] sm:$0xff] }
  0x1c   :  { %1004 = vst [vmem:[%s1410_s1 + $0x8] sm:$0xff] %v700_v62  ;;  %v248_v12 = vrot.slane %v113_v59, %v1145_v24  ;;  %v50_v13 = vmax.f32 %v17_v60, %v1024_v61  ;;  %v718_v14 = vrot.slane %v1072_v3, %v1165_v36  ;;  %v99_v20 = vmax.f32 %v1039_v2, %v1055_v8  ;;  %v1058_v59 = vld [vmem:[%s1409_s0 + $0x1d8] sm:$0xff] }
  0x1d   :  { %v255_v15 = vrot.slane %v241_v6, %v1145_v24  ;;  %v258_v16 = vcombine.high %v114_v5, %v114_v5  ;;  %v265_v17 = vrot.slane %v114_v5, %v1145_v24  ;;  %v732_v18 = vrot.slane %v1074_v10, %v1165_v36  ;;  %v21_v6 = vld [vmem:[%s1409_s0 + $0x68] sm:$0xff] }
  0x1e   :  { %v256_v19 = vcombine.high %v248_v12, %v248_v12  ;;  %v100_v21 = vmax.f32 %v1040_v7, %v1056_v9  ;;  %v733_v22 = vcombine.low %v711_v4, %v718_v14  ;;  %v115_v29 = vmax.f32 %v49_v1, %v99_v20  ;;  %v1027_v1 = vld [vmem:[%s1409_s0 + $0xe0] sm:$0xff]  ;;  %v1028_v7 = vld [vmem:[%s1409_s0 + $0xe8] sm:$0xff] }
  0x1f   :  { %v257_v23 = vcombine.high %v255_v15, %v255_v15  ;;  %v272_v25 = vrot.slane %v258_v16, %v1145_v24  ;;  %v273_v26 = vcombine.high %v265_v17, %v265_v17  ;;  %v734_v27 = vcombine.low %v725_v11, %v732_v18  ;;  %v1043_v16 = vld [vmem:[%s1409_s0 + $0x160] sm:$0xff] }
  0x20   :  { %v1075_v28 = vpack.c.bf16 %v256_v19, %v248_v12  ;;  %v116_v30 = vmax.f32 %v50_v13, %v100_v21  ;;  %v741_v31 = vrot.slane %v733_v22, %v1165_v36  ;;  %v275_v38 = vcombine.high %v115_v29, %v115_v29  ;;  %v1044_v22 = vld [vmem:[%s1409_s0 + $0x168] sm:$0xff] }
  0x21   :  { %v274_v32 = vcombine.high %v272_v25, %v272_v25  ;;  %v1076_v33 = vpack.c.bf16 %v257_v23, %v255_v15  ;;  %v1077_v34 = vpack.c.bf16 %v273_v26, %v265_v17  ;;  %v748_v35 = vrot.slane %v734_v27, %v1165_v36  ;;  %v1059_v17 = vld [vmem:[%s1409_s0 + $0x1e0] sm:$0xff]  ;;  %v1060_v23 = vld [vmem:[%s1409_s0 + $0x1e8] sm:$0xff] }
  0x22   :  { %v760_v37 = vrot.slane %v1075_v28, %v1165_v36  ;;  %v282_v39 = vrot.slane %v115_v29, %v1145_v24  ;;  %v292_v45 = vcombine.high %v116_v30, %v116_v30  ;;  %v289_v49 = vrot.slane %v275_v38, %v1145_v24 }
  0x23   :  { %v1078_v42 = vpack.c.bf16 %v274_v32, %v272_v25  ;;  %v767_v43 = vrot.slane %v1076_v33, %v1165_v36  ;;  %v774_v44 = vrot.slane %v1077_v34, %v1165_v36  ;;  %v749_v48 = vcombine.low %v741_v31, %v748_v35 }
  0x24   :  { %v290_v50 = vcombine.high %v282_v39, %v282_v39  ;;  %v299_v51 = vrot.slane %v116_v30, %v1145_v24  ;;  %v306_v56 = vrot.slane %v292_v45, %v1145_v24  ;;  %v51_v57 = vmax.f32 %v18_v40, %v1025_v41 }
  0x25   :  { %v781_v54 = vrot.slane %v1078_v42, %v1165_v36  ;;  %v782_v55 = vcombine.low %v760_v37, %v767_v43  ;;  %1005 = vst [vmem:[%s1410_s1 + $0x10] sm:$0xff] %v749_v48  ;;  %v291_v60 = vcombine.high %v289_v49, %v289_v49  ;;  %v52_v63 = vmax.f32 %v19_v46, %v1026_v47 }
  0x26   :  { %v307_v61 = vcombine.high %v299_v51, %v299_v51  ;;  %v1079_v62 = vpack.c.bf16 %v290_v50, %v282_v39  ;;  %v308_v4 = vcombine.high %v306_v56, %v306_v56  ;;  %v101_v5 = vmax.f32 %v1041_v52, %v1057_v53  ;;  %v22_v50 = vld [vmem:[%s1409_s0 + $0x70] sm:$0xff] }
  0x27   :  { %v783_v2 = vcombine.low %v774_v44, %v781_v54  ;;  %v790_v3 = vrot.slane %v782_v55, %v1165_v36  ;;  %v1080_v8 = vpack.c.bf16 %v291_v60, %v289_v49  ;;  %v102_v11 = vmax.f32 %v1042_v58, %v1058_v59 }
  0x28   :  { %v1081_v9 = vpack.c.bf16 %v307_v61, %v299_v51  ;;  %v809_v10 = vrot.slane %v1079_v62, %v1165_v36  ;;  %v1082_v13 = vpack.c.bf16 %v308_v4, %v306_v56  ;;  %v117_v14 = vmax.f32 %v51_v57, %v101_v5  ;;  %v1029_v51 = vld [vmem:[%s1409_s0 + $0xf0] sm:$0xff]  ;;  %v23_v56 = vld [vmem:[%s1409_s0 + $0x78] sm:$0xff] }
  0x29   :  { %v797_v12 = vrot.slane %v783_v2, %v1165_v36  ;;  %v53_v15 = vmax.f32 %v20_v0, %v1027_v1  ;;  %v816_v18 = vrot.slane %v1080_v8, %v1165_v36  ;;  %v118_v20 = vmax.f32 %v52_v63, %v102_v11  ;;  %v1030_v57 = vld [vmem:[%s1409_s0 + $0xf8] sm:$0xff]  ;;  %v1045_v62 = vld [vmem:[%s1409_s0 + $0x170] sm:$0xff] }
  0x2a   :  { %v823_v19 = vrot.slane %v1081_v9, %v1165_v36  ;;  %v54_v21 = vmax.f32 %v21_v6, %v1028_v7  ;;  %v830_v26 = vrot.slane %v1082_v13, %v1165_v36  ;;  %v309_v27 = vcombine.high %v117_v14, %v117_v14  ;;  %v1061_v63 = vld [vmem:[%s1409_s0 + $0x1f0] sm:$0xff]  ;;  %v1046_v4 = vld [vmem:[%s1409_s0 + $0x178] sm:$0xff] }
  0x2b   :  { %v798_v25 = vcombine.low %v790_v3, %v797_v12  ;;  %v316_v28 = vrot.slane %v117_v14, %v1145_v24  ;;  %v831_v29 = vcombine.low %v809_v10, %v816_v18  ;;  %v326_v30 = vcombine.high %v118_v20, %v118_v20  ;;  %v1062_v5 = vld [vmem:[%s1409_s0 + $0x1f8] sm:$0xff] }
  0x2c   :  { %v333_v31 = vrot.slane %v118_v20, %v1145_v24  ;;  %v103_v32 = vmax.f32 %v1043_v16, %v1059_v17  ;;  %v832_v33 = vcombine.low %v823_v19, %v830_v26  ;;  %v323_v34 = vrot.slane %v309_v27, %v1145_v24 }
  0x2d   :  { %1006 = vst [vmem:[%s1410_s1 + $0x18] sm:$0xff] %v798_v25  ;;  %v324_v35 = vcombine.high %v316_v28, %v316_v28  ;;  %v104_v37 = vmax.f32 %v1044_v22, %v1060_v23  ;;  %v839_v38 = vrot.slane %v831_v29, %v1165_v36  ;;  %v340_v39 = vrot.slane %v326_v30, %v1145_v24 }
  0x2e   :  { %v341_v40 = vcombine.high %v333_v31, %v333_v31  ;;  %v119_v41 = vmax.f32 %v53_v15, %v103_v32  ;;  %v846_v42 = vrot.slane %v832_v33, %v1165_v36  ;;  %v325_v43 = vcombine.high %v323_v34, %v323_v34 }
  0x2f   :  { %v1083_v44 = vpack.c.bf16 %v324_v35, %v316_v28  ;;  %v120_v45 = vmax.f32 %v54_v21, %v104_v37  ;;  %v342_v46 = vcombine.high %v340_v39, %v340_v39  ;;  %v55_v3 = vmax.f32 %v22_v50, %v1029_v51 }
  0x30   :  { %v1085_v47 = vpack.c.bf16 %v341_v40, %v333_v31  ;;  %v343_v48 = vcombine.high %v119_v41, %v119_v41  ;;  %v350_v49 = vrot.slane %v119_v41, %v1145_v24  ;;  %v847_v52 = vcombine.low %v839_v38, %v846_v42 }
  0x31   :  { %v1084_v53 = vpack.c.bf16 %v325_v43, %v323_v34  ;;  %v858_v54 = vrot.slane %v1083_v44, %v1165_v36  ;;  %v360_v55 = vcombine.high %v120_v45, %v120_v45  ;;  %v1086_v58 = vpack.c.bf16 %v342_v46, %v340_v39 }
  0x32   :  { %v872_v59 = vrot.slane %v1085_v47, %v1165_v36  ;;  %v357_v60 = vrot.slane %v343_v48, %v1145_v24  ;;  %v358_v61 = vcombine.high %v350_v49, %v350_v49  ;;  %1007 = vst [vmem:[%s1410_s1 + $0x20] sm:$0xff] %v847_v52  ;;  %v367_v1 = vrot.slane %v120_v45, %v1145_v24 }
  0x33   :  { %v865_v0 = vrot.slane %v1084_v53, %v1165_v36  ;;  %v374_v2 = vrot.slane %v360_v55, %v1145_v24  ;;  %v879_v6 = vrot.slane %v1086_v58, %v1165_v36  ;;  %v56_v9 = vmax.f32 %v23_v56, %v1030_v57 }
  0x34   :  { %v359_v7 = vcombine.high %v357_v60, %v357_v60  ;;  %v1087_v8 = vpack.c.bf16 %v358_v61, %v350_v49  ;;  %v375_v11 = vcombine.high %v367_v1, %v367_v1  ;;  %v105_v13 = vmax.f32 %v1045_v62, %v1061_v63 }
  0x35   :  { %v880_v10 = vcombine.low %v858_v54, %v865_v0  ;;  %v376_v12 = vcombine.high %v374_v2, %v374_v2  ;;  %v881_v14 = vcombine.low %v872_v59, %v879_v6  ;;  %v106_v17 = vmax.f32 %v1046_v4, %v1062_v5 }
  0x36   :  { %v1088_v15 = vpack.c.bf16 %v359_v7, %v357_v60  ;;  %v907_v16 = vrot.slane %v1087_v8, %v1165_v36  ;;  %v1089_v19 = vpack.c.bf16 %v375_v11, %v367_v1  ;;  %v121_v21 = vmax.f32 %v55_v3, %v105_v13 }
  0x37   :  { %v888_v18 = vrot.slane %v880_v10, %v1165_v36  ;;  %v1090_v20 = vpack.c.bf16 %v376_v12, %v374_v2  ;;  %v895_v22 = vrot.slane %v881_v14, %v1165_v36  ;;  %v122_v25 = vmax.f32 %v56_v9, %v106_v17 }
  0x38   :  { %v914_v23 = vrot.slane %v1088_v15, %v1165_v36  ;;  %v921_v26 = vrot.slane %v1089_v19, %v1165_v36  ;;  %v377_v28 = vcombine.high %v121_v21, %v121_v21  ;;  %v384_v29 = vrot.slane %v121_v21, %v1145_v24 }
  0x39   :  { %v928_v27 = vrot.slane %v1090_v20, %v1165_v36  ;;  %v896_v30 = vcombine.low %v888_v18, %v895_v22  ;;  %v394_v32 = vcombine.high %v122_v25, %v122_v25  ;;  %v401_v33 = vrot.slane %v122_v25, %v1145_v24 }
  0x3a   :  { %v929_v31 = vcombine.low %v907_v16, %v914_v23  ;;  %v391_v35 = vrot.slane %v377_v28, %v1145_v24  ;;  %v392_v37 = vcombine.high %v384_v29, %v384_v29 }
  0x3b   :  { %v930_v34 = vcombine.low %v921_v26, %v928_v27  ;;  %1008 = vst [vmem:[%s1410_s1 + $0x28] sm:$0xff] %v896_v30  ;;  %v408_v39 = vrot.slane %v394_v32, %v1145_v24  ;;  %v409_v40 = vcombine.high %v401_v33, %v401_v33 }
  0x3c   :  { %v937_v38 = vrot.slane %v929_v31, %v1165_v36  ;;  %v393_v42 = vcombine.high %v391_v35, %v391_v35  ;;  %v1091_v43 = vpack.c.bf16 %v392_v37, %v384_v29 }
  0x3d   :  { %v944_v41 = vrot.slane %v930_v34, %v1165_v36  ;;  %v410_v44 = vcombine.high %v408_v39, %v408_v39  ;;  %v1093_v45 = vpack.c.bf16 %v409_v40, %v401_v33 }
  0x3e   :  { %v1092_v47 = vpack.c.bf16 %v393_v42, %v391_v35  ;;  %v956_v48 = vrot.slane %v1091_v43, %v1165_v36 }
  0x3f   :  { %v945_v46 = vcombine.low %v937_v38, %v944_v41  ;;  %v1094_v49 = vpack.c.bf16 %v410_v44, %v408_v39  ;;  %v970_v50 = vrot.slane %v1093_v45, %v1165_v36 }
  0x40   :  { %v963_v24 = vrot.slane %v1092_v47, %v1165_v36 }
  0x41   :  { %1009 = vst [vmem:[%s1410_s1 + $0x30] sm:$0xff] %v945_v46  ;;  %v977_v51 = vrot.slane %v1094_v49, %v1165_v36 }
  0x42   :  { %v978_v52 = vcombine.low %v956_v48, %v963_v24 }
  0x43   :  { %v979_v53 = vcombine.low %v970_v50, %v977_v51 }
  0x44   :  { %v986_v54 = vrot.slane %v978_v52, %v1165_v36 }
  0x45   :  { %v993_v55 = vrot.slane %v979_v53, %v1165_v36 }
  0x47   :  { %v994_v56 = vcombine.low %v986_v54, %v993_v55 }
  0x49   :  { %1010 = vst [vmem:[%s1410_s1 + $0x38] sm:$0xff] %v994_v56 }

// kernel: mofishnet150_forward.3
= control target key start
LH: loop header
LB: loop body
LE: loop exit
PB: predicated region body
PF: predicated region fallthrough
CT: control target
= control target key end

     0   :  { %s5632_s12 = smov 0   ;;  %s5634_s13 = smov 0   ;;  %s6320_s0 = inlined_call_operand.vmem [shape: bf16[8,8192], index: 0, kind: input, shape index: {}]   ;;  %s6321_s1 = inlined_call_operand.vmem [shape: bf16[8192,256], index: 1, kind: input, shape index: {}]   ;;  %s6322_s2 = inlined_call_operand.vmem [shape: f32[1,256], index: 2, kind: input, shape index: {}]   ;;  %s6323_s3 = inlined_call_operand.vmem [shape: f32[8,256], index: 3, kind: output, shape index: {}]  }
   0x1   :  { %s5636_s14 = smov 0  }
   0x2 LB: > { %s22_s15 = sadd.s32 1, %s5605_s13  ;;  %p4205_p0 = scmp.ge.s32.totalorder %s5609_s14, 1  ;;  %s5609_s14 = sphi %s5636_s14, %s13_s14   ;;  %s5605_s13 = sphi %s5634_s13, %s6325_s13   ;;  %s5601_s12 = sphi %s5632_s12, %s6324_s12  }
   0x3   : > { %p23_p1 = scmp.ge.s32.totalorder %s22_s15, 2  ;;  %p168_p2 = scmp.lt.s32.totalorder %s5609_s14, 3 }
   0x5   : > { %s6327_s15 = smov (%p23_p1, %s22_s15), 0  ;;  %p169_p3 = pnand %p4205_p0, %p168_p2 }
   0x6   : > { %s4206_s16 = sshll.u32 (!%p169_p3), %s5601_s12, 9  ;;  %p4209_p5 = scmp.ne.s32.totalorder (!%p169_p3), %s5601_s12, 0 }
   0x7   : > { %172 = sbr.rel (%p169_p3) target bundleno = 764 (0x2fc), region = 32  ;;  %p203_p4 = scmp.lt.s32.totalorder (!%p169_p3), %s4206_s16, 1023 }
   0xe   : > { %s6329_s16 = smov (!%p203_p4, %s4206_s16), 1023  ;;  %227 = sbr.rel (%p4209_p5) target bundleno = 21 (0x15), region = 36 }
   0xf   : > { %s4761_s17 = sshll.u32 %s6329_s16, 3  ;;  %v5611_v0 = vmov (!%p4209_p5), 0.0  }
  0x10   : > { %s5656_s20 = scalar_lea.vmem %s6321_s1, %s4761_s17  ;;  %228 = vst [vmem:[#allocation2] sm:$0xff] (!%p4209_p5), %v5611_v0  ;;  %229 = vst [vmem:[#allocation2 + $0x8] sm:$0xff] (!%p4209_p5), %v5611_v0 }
  0x15 PF: > { %v4787_v1 = vld [vmem:[%s5656_s20 + $0x4] ss:$8 sps:$4 sm:$0xff]   ;;  %v4791_v3 = vld [vmem:[%s5656_s20] ss:$8 sps:$4 sm:$0xff]   ;;  %v4793_v5 = vld [vmem:[%s5656_s20 + $0x14] ss:$8 sps:$4 sm:$0xff]  }
  0x16   : > { %v4789_v2 = vld [vmem:[%s5656_s20 + $0x104] ss:$8 sps:$4 sm:$0xff]   ;;  %3437 = vmatprep.subr.bf16.mxu0 %v4787_v1  ;;  %v4792_v4 = vld [vmem:[%s5656_s20 + $0x100] ss:$8 sps:$4 sm:$0xff]   ;;  %v4795_v6 = vld [vmem:[%s5656_s20 + $0x114] ss:$8 sps:$4 sm:$0xff]  }
  0x17   : > { %3478 = vmatprep.subr.bf16.mxu1 %v4789_v2  ;;  %3438 = vmatpush1.bf16.msra.mxu0 %v4791_v3  ;;  %v4797_v7 = vld [vmem:[%s5656_s20 + $0x10] ss:$8 sps:$4 sm:$0xff]   ;;  %v4799_v9 = vld [vmem:[%s5656_s20 + $0x24] ss:$8 sps:$4 sm:$0xff]   ;;  %v4803_v11 = vld [vmem:[%s5656_s20 + $0x20] ss:$8 sps:$4 sm:$0xff]  }
  0x18   : > { %3479 = vmatpush1.bf16.msra.mxu1 %v4792_v4  ;;  %3439 = vmatprep.subr.bf16.mxu0 %v4793_v5  ;;  %v4798_v8 = vld [vmem:[%s5656_s20 + $0x110] ss:$8 sps:$4 sm:$0xff]   ;;  %v4801_v10 = vld [vmem:[%s5656_s20 + $0x124] ss:$8 sps:$4 sm:$0xff]   ;;  %v4804_v12 = vld [vmem:[%s5656_s20 + $0x120] ss:$8 sps:$4 sm:$0xff]  }
  0x19   : > { %3480 = vmatprep.subr.bf16.mxu1 %v4795_v6  ;;  %v4805_v13 = vld [vmem:[%s5656_s20 + $0x34] ss:$8 sps:$4 sm:$0xff]   ;;  %v4809_v15 = vld [vmem:[%s5656_s20 + $0x30] ss:$8 sps:$4 sm:$0xff]   ;;  %v4811_v17 = vld [vmem:[%s5656_s20 + $0x44] ss:$8 sps:$4 sm:$0xff]  }
  0x1a   : > { %v4807_v14 = vld [vmem:[%s5656_s20 + $0x134] ss:$8 sps:$4 sm:$0xff]   ;;  %v4810_v16 = vld [vmem:[%s5656_s20 + $0x130] ss:$8 sps:$4 sm:$0xff]   ;;  %v4813_v18 = vld [vmem:[%s5656_s20 + $0x144] ss:$8 sps:$4 sm:$0xff]  }
  0x1b   : > { %3440 = vmatpush1.bf16.msra.mxu0 %v4797_v7  ;;  %v4815_v19 = vld [vmem:[%s5656_s20 + $0x40] ss:$8 sps:$4 sm:$0xff]   ;;  %v4817_v21 = vld [vmem:[%s5656_s20 + $0x54] ss:$8 sps:$4 sm:$0xff]   ;;  %v4821_v23 = vld [vmem:[%s5656_s20 + $0x50] ss:$8 sps:$4 sm:$0xff]  }
  0x1c   : > { %3481 = vmatpush1.bf16.msra.mxu1 %v4798_v8  ;;  %3441 = vmatprep.subr.bf16.mxu0 %v4799_v9  ;;  %v4816_v20 = vld [vmem:[%s5656_s20 + $0x140] ss:$8 sps:$4 sm:$0xff]   ;;  %v4819_v22 = vld [vmem:[%s5656_s20 + $0x154] ss:$8 sps:$4 sm:$0xff]   ;;  %v4822_v24 = vld [vmem:[%s5656_s20 + $0x150] ss:$8 sps:$4 sm:$0xff]  }
  0x1d   : > { %3482 = vmatprep.subr.bf16.mxu1 %v4801_v10  ;;  %v4823_v25 = vld [vmem:[%s5656_s20 + $0x64] ss:$8 sps:$4 sm:$0xff]   ;;  %v4827_v27 = vld [vmem:[%s5656_s20 + $0x60] ss:$8 sps:$4 sm:$0xff]   ;;  %v4829_v29 = vld [vmem:[%s5656_s20 + $0x74] ss:$8 sps:$4 sm:$0xff]  }
  0x1e   : > { %v4825_v26 = vld [vmem:[%s5656_s20 + $0x164] ss:$8 sps:$4 sm:$0xff]   ;;  %v4828_v28 = vld [vmem:[%s5656_s20 + $0x160] ss:$8 sps:$4 sm:$0xff]   ;;  %v4831_v30 = vld [vmem:[%s5656_s20 + $0x174] ss:$8 sps:$4 sm:$0xff]  }
  0x1f   : > { %3442 = vmatpush1.bf16.msra.mxu0 %v4803_v11  ;;  %v4833_v31 = vld [vmem:[%s5656_s20 + $0x70] ss:$8 sps:$4 sm:$0xff]   ;;  %v4835_v33 = vld [vmem:[%s5656_s20 + $0x84] ss:$8 sps:$4 sm:$0xff]   ;;  %s4210_s21 = sshll.u32 %s5601_s12, 12  ;;  %p4756_p6 = scmp.ne.s32.totalorder %s5601_s12, 1 }
  0x20   : > { %3483 = vmatpush1.bf16.msra.mxu1 %v4804_v12  ;;  %3443 = vmatprep.subr.bf16.mxu0 %v4805_v13  ;;  %v4834_v32 = vld [vmem:[%s5656_s20 + $0x170] ss:$8 sps:$4 sm:$0xff]   ;;  %v4837_v34 = vld [vmem:[%s5656_s20 + $0x184] ss:$8 sps:$4 sm:$0xff]   ;;  %v4839_v35 = vld [vmem:[%s5656_s20 + $0x80] ss:$8 sps:$4 sm:$0xff]  }
  0x21   : > { %3484 = vmatprep.subr.bf16.mxu1 %v4807_v14  ;;  %v4840_v36 = vld [vmem:[%s5656_s20 + $0x180] ss:$8 sps:$4 sm:$0xff]   ;;  %v4841_v37 = vld [vmem:[%s5656_s20 + $0x94] ss:$8 sps:$4 sm:$0xff]   ;;  %s231_s22 = sshra.s32 %s4210_s21, 7 }
  0x22   : > { %v4843_v38 = vld [vmem:[%s5656_s20 + $0x194] ss:$8 sps:$4 sm:$0xff]   ;;  %v4845_v39 = vld [vmem:[%s5656_s20 + $0x90] ss:$8 sps:$4 sm:$0xff]   ;;  %v4847_v41 = vld [vmem:[%s5656_s20 + $0xa4] ss:$8 sps:$4 sm:$0xff]  }
  0x23   : > { %3444 = vmatpush1.bf16.msra.mxu0 %v4809_v15  ;;  %v4846_v40 = vld [vmem:[%s5656_s20 + $0x190] ss:$8 sps:$4 sm:$0xff]   ;;  %s4211_s23 = sshll.u32 %s231_s22, 2  ;;  %v4849_v42 = vld [vmem:[%s5656_s20 + $0x1a4] ss:$8 sps:$4 sm:$0xff]  }
  0x24   : > { %3485 = vmatpush1.bf16.msra.mxu1 %v4810_v16  ;;  %3445 = vmatprep.subr.bf16.mxu0 %v4811_v17  ;;  %v4851_v43 = vld [vmem:[%s5656_s20 + $0xa0] ss:$8 sps:$4 sm:$0xff]   ;;  %s5707_s26 = scalar_lea.vmem %s6320_s0, %s4211_s23  ;;  %v4853_v45 = vld [vmem:[%s5656_s20 + $0xb4] ss:$8 sps:$4 sm:$0xff]   ;;  %v4857_v50 = vld [vmem:[%s5656_s20 + $0xb0] ss:$8 sps:$4 sm:$0xff]  }
  0x25   : > { %3486 = vmatprep.subr.bf16.mxu1 %v4813_v18  ;;  %v4852_v44 = vld [vmem:[%s5656_s20 + $0x1a0] ss:$8 sps:$4 sm:$0xff]   ;;  %v4855_v46 = vld [vmem:[%s5656_s20 + $0x1b4] ss:$8 sps:$4 sm:$0xff]   ;;  %v4858_v51 = vld [vmem:[%s5656_s20 + $0x1b0] ss:$8 sps:$4 sm:$0xff]  }
  0x26   : > { %v235_v47 = vld [vmem:[%s5707_s26] sm:$0xff]  ;;  %v236_v49 = vld [vmem:[%s5707_s26 + $0x8] sm:$0xff]  ;;  %v4865_v57 = vld [vmem:[%s5656_s20 + $0xd4] ss:$8 sps:$4 sm:$0xff]  }
  0x27   : > { %3446 = vmatpush1.bf16.msra.mxu0 %v4815_v19  ;;  %v4213_v48 = vcombine.high %v235_v47, %v235_v47  ;;  %v4215_v52 = vcombine.high %v236_v49, %v236_v49  ;;  %v4859_v53 = vld [vmem:[%s5656_s20 + $0xc4] ss:$8 sps:$4 sm:$0xff]   ;;  %v4863_v55 = vld [vmem:[%s5656_s20 + $0xc0] ss:$8 sps:$4 sm:$0xff]   ;;  %v4867_v58 = vld [vmem:[%s5656_s20 + $0x1d4] ss:$8 sps:$4 sm:$0xff]   ;;  %v4212_v7 = vcombine.low %v235_v47, %v235_v47  ;;  %v4214_v8 = vcombine.low %v236_v49, %v236_v49 }
  0x28   : > { %3487 = vmatpush1.bf16.msra.mxu1 %v4816_v20  ;;  %3447 = vmatprep.subr.bf16.mxu0 %v4817_v21  ;;  %v4861_v54 = vld [vmem:[%s5656_s20 + $0x1c4] ss:$8 sps:$4 sm:$0xff]   ;;  %v4864_v56 = vld [vmem:[%s5656_s20 + $0x1c0] ss:$8 sps:$4 sm:$0xff]   ;;  %v4869_v59 = vld [vmem:[%s5656_s20 + $0xd0] ss:$8 sps:$4 sm:$0xff]  }
  0x29   : > { %3488 = vmatprep.subr.bf16.mxu1 %v4819_v22  ;;  %3469 = vmatprep.mubr.bf16.mxu0 %v4213_v48  ;;  %v4870_v60 = vld [vmem:[%s5656_s20 + $0x1d0] ss:$8 sps:$4 sm:$0xff]   ;;  %v4871_v61 = vld [vmem:[%s5656_s20 + $0xe4] ss:$8 sps:$4 sm:$0xff]   ;;  %v4875_v63 = vld [vmem:[%s5656_s20 + $0xe0] ss:$8 sps:$4 sm:$0xff]  }
  0x2a   : > { %3510 = vmatprep.mubr.bf16.mxu1 %v4215_v52  ;;  %v4873_v62 = vld [vmem:[%s5656_s20 + $0x1e4] ss:$8 sps:$4 sm:$0xff]   ;;  %v4876_v0 = vld [vmem:[%s5656_s20 + $0x1e0] ss:$8 sps:$4 sm:$0xff]   ;;  %v4877_v1 = vld [vmem:[%s5656_s20 + $0xf4] ss:$8 sps:$4 sm:$0xff]  }
  0x2b   : > { %3448 = vmatpush1.bf16.msra.mxu0 %v4821_v23  ;;  %v4879_v2 = vld [vmem:[%s5656_s20 + $0x1f4] ss:$8 sps:$4 sm:$0xff]   ;;  %v4881_v3 = vld [vmem:[%s5656_s20 + $0xf0] ss:$8 sps:$4 sm:$0xff]   ;;  %v4889_v5 = vld [vmem:[%s5656_s20 + $0x204] ss:$8 sps:$4 sm:$0xff]  }
  0x2c   : > { %3489 = vmatpush1.bf16.msra.mxu1 %v4822_v24  ;;  %3449 = vmatprep.subr.bf16.mxu0 %v4823_v25  ;;  %v4882_v4 = vld [vmem:[%s5656_s20 + $0x1f0] ss:$8 sps:$4 sm:$0xff]   ;;  %v4892_v6 = vld [vmem:[%s5656_s20 + $0x304] ss:$8 sps:$4 sm:$0xff]   ;;  %v4887_v9 = vld [vmem:[%s5656_s20 + $0x200] ss:$8 sps:$4 sm:$0xff]  }
  0x2d   : > { %3490 = vmatprep.subr.bf16.mxu1 %v4825_v26  ;;  %v4890_v10 = vld [vmem:[%s5656_s20 + $0x300] ss:$8 sps:$4 sm:$0xff]   ;;  %v4895_v11 = vld [vmem:[%s5656_s20 + $0x214] ss:$8 sps:$4 sm:$0xff]   ;;  %v4893_v13 = vld [vmem:[%s5656_s20 + $0x210] ss:$8 sps:$4 sm:$0xff]  }
  0x2e   : > { %v4898_v12 = vld [vmem:[%s5656_s20 + $0x314] ss:$8 sps:$4 sm:$0xff]   ;;  %v4896_v14 = vld [vmem:[%s5656_s20 + $0x310] ss:$8 sps:$4 sm:$0xff]   ;;  %v4901_v15 = vld [vmem:[%s5656_s20 + $0x224] ss:$8 sps:$4 sm:$0xff]  }
  0x2f   : > { %3450 = vmatpush1.bf16.msra.mxu0 %v4827_v27  ;;  %v4904_v16 = vld [vmem:[%s5656_s20 + $0x324] ss:$8 sps:$4 sm:$0xff]   ;;  %v4899_v17 = vld [vmem:[%s5656_s20 + $0x220] ss:$8 sps:$4 sm:$0xff]   ;;  %v4907_v19 = vld [vmem:[%s5656_s20 + $0x234] ss:$8 sps:$4 sm:$0xff]  }
  0x30   : > { %3491 = vmatpush1.bf16.msra.mxu1 %v4828_v28  ;;  %3451 = vmatprep.subr.bf16.mxu0 %v4829_v29  ;;  %v4902_v18 = vld [vmem:[%s5656_s20 + $0x320] ss:$8 sps:$4 sm:$0xff]   ;;  %v4910_v20 = vld [vmem:[%s5656_s20 + $0x334] ss:$8 sps:$4 sm:$0xff]   ;;  %v4905_v21 = vld [vmem:[%s5656_s20 + $0x230] ss:$8 sps:$4 sm:$0xff]  }
  0x31   : > { %3492 = vmatprep.subr.bf16.mxu1 %v4831_v30  ;;  %v4908_v22 = vld [vmem:[%s5656_s20 + $0x330] ss:$8 sps:$4 sm:$0xff]   ;;  %v4913_v23 = vld [vmem:[%s5656_s20 + $0x244] ss:$8 sps:$4 sm:$0xff]   ;;  %v4911_v25 = vld [vmem:[%s5656_s20 + $0x240] ss:$8 sps:$4 sm:$0xff]  }
  0x32   : > { %v4916_v24 = vld [vmem:[%s5656_s20 + $0x344] ss:$8 sps:$4 sm:$0xff]   ;;  %v4914_v26 = vld [vmem:[%s5656_s20 + $0x340] ss:$8 sps:$4 sm:$0xff]   ;;  %v4919_v27 = vld [vmem:[%s5656_s20 + $0x254] ss:$8 sps:$4 sm:$0xff]  }
  0x33   : > { %3452 = vmatpush1.bf16.msra.mxu0 %v4833_v31  ;;  %v4922_v28 = vld [vmem:[%s5656_s20 + $0x354] ss:$8 sps:$4 sm:$0xff]   ;;  %v4917_v29 = vld [vmem:[%s5656_s20 + $0x250] ss:$8 sps:$4 sm:$0xff]   ;;  %v4925_v31 = vld [vmem:[%s5656_s20 + $0x264] ss:$8 sps:$4 sm:$0xff]  }
  0x34   : > { %3493 = vmatpush1.bf16.msra.mxu1 %v4834_v32  ;;  %3453 = vmatprep.subr.bf16.mxu0 %v4835_v33  ;;  %v4920_v30 = vld [vmem:[%s5656_s20 + $0x350] ss:$8 sps:$4 sm:$0xff]   ;;  %v4928_v32 = vld [vmem:[%s5656_s20 + $0x364] ss:$8 sps:$4 sm:$0xff]   ;;  %v4943_v47 = vld [vmem:[%s5656_s20 + $0x294] ss:$8 sps:$4 sm:$0xff]  }
  0x35   : > { %3494 = vmatprep.subr.bf16.mxu1 %v4837_v34  ;;  %v5758_v33 = vld [vmem:[%s5707_s26 + $0x10] sm:$0xff]  ;;  %v5761_v34 = vld [vmem:[%s5707_s26 + $0x18] sm:$0xff]  ;;  %v4952_v52 = vld [vmem:[%s5656_s20 + $0x3a4] ss:$8 sps:$4 sm:$0xff]  }
  0x36   : > { %v4946_v48 = vld [vmem:[%s5656_s20 + $0x394] ss:$8 sps:$4 sm:$0xff]   ;;  %v4941_v49 = vld [vmem:[%s5656_s20 + $0x290] ss:$8 sps:$4 sm:$0xff]  }
  0x37   : > { %3454 = vmatpush1.bf16.msra.mxu0 %v4839_v35  ;;  %v4923_v35 = vld [vmem:[%s5656_s20 + $0x260] ss:$8 sps:$4 sm:$0xff]  }
  0x38   : > { %3495 = vmatpush1.bf16.msra.mxu1 %v4840_v36  ;;  %3455 = vmatprep.subr.bf16.mxu0 %v4841_v37  ;;  %v4926_v36 = vld [vmem:[%s5656_s20 + $0x360] ss:$8 sps:$4 sm:$0xff]   ;;  %v4217_v37 = vcombine.high %v5758_v33, %v5758_v33 }
  0x39   : > { %3496 = vmatprep.subr.bf16.mxu1 %v4843_v38  ;;  %v4219_v38 = vcombine.high %v5761_v34, %v5761_v34 }
  0x3b   : > { %3456 = vmatpush1.bf16.msra.mxu0 %v4845_v39  ;;  %v4931_v39 = vld [vmem:[%s5656_s20 + $0x274] ss:$8 sps:$4 sm:$0xff]  }
  0x3c   : > { %3497 = vmatpush1.bf16.msra.mxu1 %v4846_v40  ;;  %3457 = vmatprep.subr.bf16.mxu0 %v4847_v41  ;;  %v4934_v40 = vld [vmem:[%s5656_s20 + $0x374] ss:$8 sps:$4 sm:$0xff]   ;;  %v4929_v41 = vld [vmem:[%s5656_s20 + $0x270] ss:$8 sps:$4 sm:$0xff]  }
  0x3d   : > { %3498 = vmatprep.subr.bf16.mxu1 %v4849_v42  ;;  %v4932_v42 = vld [vmem:[%s5656_s20 + $0x370] ss:$8 sps:$4 sm:$0xff]  }
  0x3f   : > { %3458 = vmatpush1.bf16.msra.mxu0 %v4851_v43  ;;  %v4937_v43 = vld [vmem:[%s5656_s20 + $0x284] ss:$8 sps:$4 sm:$0xff]  }
  0x40   : > { %3499 = vmatpush1.bf16.msra.mxu1 %v4852_v44  ;;  %3459 = vmatprep.subr.bf16.mxu0 %v4853_v45  ;;  %v4940_v44 = vld [vmem:[%s5656_s20 + $0x384] ss:$8 sps:$4 sm:$0xff]   ;;  %v4935_v45 = vld [vmem:[%s5656_s20 + $0x280] ss:$8 sps:$4 sm:$0xff]  }
  0x41   : > { %3500 = vmatprep.subr.bf16.mxu1 %v4855_v46  ;;  %v4938_v46 = vld [vmem:[%s5656_s20 + $0x380] ss:$8 sps:$4 sm:$0xff]  }
  0x43   : > { %3460 = vmatpush1.bf16.msra.mxu0 %v4857_v50  ;;  %v4944_v50 = vld [vmem:[%s5656_s20 + $0x390] ss:$8 sps:$4 sm:$0xff]  }
  0x44   : > { %3501 = vmatpush1.bf16.msra.mxu1 %v4858_v51  ;;  %3461 = vmatprep.subr.bf16.mxu0 %v4859_v53  ;;  %v4949_v51 = vld [vmem:[%s5656_s20 + $0x2a4] ss:$8 sps:$4 sm:$0xff]   ;;  %v4947_v53 = vld [vmem:[%s5656_s20 + $0x2a0] ss:$8 sps:$4 sm:$0xff]  }
  0x45   : > { %3502 = vmatprep.subr.bf16.mxu1 %v4861_v54  ;;  %v4950_v54 = vld [vmem:[%s5656_s20 + $0x3a0] ss:$8 sps:$4 sm:$0xff]  }
  0x47   : > { %3462 = vmatpush1.bf16.msra.mxu0 %v4863_v55  ;;  %v4955_v55 = vld [vmem:[%s5656_s20 + $0x2b4] ss:$8 sps:$4 sm:$0xff]  }
  0x48   : > { %3503 = vmatpush1.bf16.msra.mxu1 %v4864_v56  ;;  %3463 = vmatprep.subr.bf16.mxu0 %v4865_v57  ;;  %v4958_v56 = vld [vmem:[%s5656_s20 + $0x3b4] ss:$8 sps:$4 sm:$0xff]   ;;  %v4953_v57 = vld [vmem:[%s5656_s20 + $0x2b0] ss:$8 sps:$4 sm:$0xff]  }
  0x49   : > { %3504 = vmatprep.subr.bf16.mxu1 %v4867_v58  ;;  %v4956_v58 = vld [vmem:[%s5656_s20 + $0x3b0] ss:$8 sps:$4 sm:$0xff]  }
  0x4b   : > { %3464 = vmatpush1.bf16.msra.mxu0 %v4869_v59  ;;  %v4961_v59 = vld [vmem:[%s5656_s20 + $0x2c4] ss:$8 sps:$4 sm:$0xff]  }
  0x4c   : > { %3505 = vmatpush1.bf16.msra.mxu1 %v4870_v60  ;;  %3465 = vmatprep.subr.bf16.mxu0 %v4871_v61  ;;  %v4964_v60 = vld [vmem:[%s5656_s20 + $0x3c4] ss:$8 sps:$4 sm:$0xff]   ;;  %v4959_v61 = vld [vmem:[%s5656_s20 + $0x2c0] ss:$8 sps:$4 sm:$0xff]  }
  0x4d   : > { %3506 = vmatprep.subr.bf16.mxu1 %v4873_v62  ;;  %v4962_v62 = vld [vmem:[%s5656_s20 + $0x3c0] ss:$8 sps:$4 sm:$0xff]  }
  0x4f   : > { %3466 = vmatpush1.bf16.msra.mxu0 %v4875_v63  ;;  %v4967_v63 = vld [vmem:[%s5656_s20 + $0x2d4] ss:$8 sps:$4 sm:$0xff]  }
  0x50   : > { %3507 = vmatpush1.bf16.msra.mxu1 %v4876_v0  ;;  %3467 = vmatprep.subr.bf16.mxu0 %v4877_v1  ;;  %v4970_v0 = vld [vmem:[%s5656_s20 + $0x3d4] ss:$8 sps:$4 sm:$0xff]   ;;  %v4965_v1 = vld [vmem:[%s5656_s20 + $0x2d0] ss:$8 sps:$4 sm:$0xff]  }
  0x51   : > { %3508 = vmatprep.subr.bf16.mxu1 %v4879_v2  ;;  %v4968_v2 = vld [vmem:[%s5656_s20 + $0x3d0] ss:$8 sps:$4 sm:$0xff]  }
  0x53   : > { %3468 = vmatpush1.bf16.msra.mxu0 %v4881_v3  ;;  %v4973_v3 = vld [vmem:[%s5656_s20 + $0x2e4] ss:$8 sps:$4 sm:$0xff]  }
  0x54   : > { %3509 = vmatpush1.bf16.msra.mxu1 %v4882_v4  ;;  %3519 = vmatprep.subr.bf16.mxu0 %v4889_v5  ;;  %v4976_v4 = vld [vmem:[%s5656_s20 + $0x3e4] ss:$8 sps:$4 sm:$0xff]   ;;  %v4971_v5 = vld [vmem:[%s5656_s20 + $0x2e0] ss:$8 sps:$4 sm:$0xff]  }
  0x55   : > { %3560 = vmatprep.subr.bf16.mxu1 %v4892_v6  ;;  %v4974_v6 = vld [vmem:[%s5656_s20 + $0x3e0] ss:$8 sps:$4 sm:$0xff]  }
  0x56   : > { %3470 = vmatmul.mubr.bf16.vlgmr.msra.gmra.mrb[0].mxu0 %v4212_v7  ;;  %v4979_v7 = vld [vmem:[%s5656_s20 + $0x2f4] ss:$8 sps:$4 sm:$0xff]  }
  0x57   : > { %3511 = vmatmul.mubr.bf16.vlgmr.msra.gmra.mrb[0].mxu1 %v4214_v8  ;;  %3520 = vmatpush1.bf16.msra.mxu0 %v4887_v9  ;;  %v4982_v8 = vld [vmem:[%s5656_s20 + $0x3f4] ss:$8 sps:$4 sm:$0xff]   ;;  %v4977_v9 = vld [vmem:[%s5656_s20 + $0x2f0] ss:$8 sps:$4 sm:$0xff]  }
  0x58   : > { %3561 = vmatpush1.bf16.msra.mxu1 %v4890_v10  ;;  %3521 = vmatprep.subr.bf16.mxu0 %v4895_v11  ;;  %v4980_v10 = vld [vmem:[%s5656_s20 + $0x3f0] ss:$8 sps:$4 sm:$0xff]   ;;  %v4989_v11 = vld [vmem:[%s5656_s20 + $0x404] ss:$8 sps:$4 sm:$0xff]  }
  0x59   : > { %3562 = vmatprep.subr.bf16.mxu1 %v4898_v12  ;;  %3551 = vmatprep.mubr.bf16.mxu0 %v4217_v37  ;;  %v4992_v12 = vld [vmem:[%s5656_s20 + $0x504] ss:$8 sps:$4 sm:$0xff]   ;;  %v5019_v37 = vld [vmem:[%s5656_s20 + $0x454] ss:$8 sps:$4 sm:$0xff]  }
  0x5a   : > { %3592 = vmatprep.mubr.bf16.mxu1 %v4219_v38  ;;  %v5022_v38 = vld [vmem:[%s5656_s20 + $0x554] ss:$8 sps:$4 sm:$0xff]  }
  0x5b   : > { %3522 = vmatpush1.bf16.msra.mxu0 %v4893_v13  ;;  %v4216_v13 = vcombine.low %v5758_v33, %v5758_v33  ;;  %v5013_v33 = vld [vmem:[%s5656_s20 + $0x444] ss:$8 sps:$4 sm:$0xff]  }
  0x5c   : > { %3563 = vmatpush1.bf16.msra.mxu1 %v4896_v14  ;;  %3523 = vmatprep.subr.bf16.mxu0 %v4901_v15  ;;  %v4218_v14 = vcombine.low %v5761_v34, %v5761_v34  ;;  %v4987_v15 = vld [vmem:[%s5656_s20 + $0x400] ss:$8 sps:$4 sm:$0xff]   ;;  %v5016_v34 = vld [vmem:[%s5656_s20 + $0x544] ss:$8 sps:$4 sm:$0xff]  }
  0x5d   : > { %3564 = vmatprep.subr.bf16.mxu1 %v4904_v16  ;;  %v4990_v16 = vld [vmem:[%s5656_s20 + $0x500] ss:$8 sps:$4 sm:$0xff]  }
  0x5f   : > { %3524 = vmatpush1.bf16.msra.mxu0 %v4899_v17  ;;  %v4995_v17 = vld [vmem:[%s5656_s20 + $0x414] ss:$8 sps:$4 sm:$0xff]  }
  0x60   : > { %3565 = vmatpush1.bf16.msra.mxu1 %v4902_v18  ;;  %3525 = vmatprep.subr.bf16.mxu0 %v4907_v19  ;;  %v4998_v18 = vld [vmem:[%s5656_s20 + $0x514] ss:$8 sps:$4 sm:$0xff]   ;;  %v5816_v19 = vld [vmem:[%s5707_s26 + $0x20] sm:$0xff] }
  0x61   : > { %3566 = vmatprep.subr.bf16.mxu1 %v4910_v20  ;;  %v5819_v20 = vld [vmem:[%s5707_s26 + $0x28] sm:$0xff] }
  0x63   : > { %3526 = vmatpush1.bf16.msra.mxu0 %v4905_v21  ;;  %v4221_v21 = vcombine.high %v5816_v19, %v5816_v19 }
  0x64   : > { %3567 = vmatpush1.bf16.msra.mxu1 %v4908_v22  ;;  %3527 = vmatprep.subr.bf16.mxu0 %v4913_v23  ;;  %v4223_v22 = vcombine.high %v5819_v20, %v5819_v20  ;;  %v4993_v23 = vld [vmem:[%s5656_s20 + $0x410] ss:$8 sps:$4 sm:$0xff]  }
  0x65   : > { %3568 = vmatprep.subr.bf16.mxu1 %v4916_v24  ;;  %v4996_v24 = vld [vmem:[%s5656_s20 + $0x510] ss:$8 sps:$4 sm:$0xff]  }
  0x67   : > { %3528 = vmatpush1.bf16.msra.mxu0 %v4911_v25  ;;  %v5001_v25 = vld [vmem:[%s5656_s20 + $0x424] ss:$8 sps:$4 sm:$0xff]  }
  0x68   : > { %3569 = vmatpush1.bf16.msra.mxu1 %v4914_v26  ;;  %3529 = vmatprep.subr.bf16.mxu0 %v4919_v27  ;;  %v5004_v26 = vld [vmem:[%s5656_s20 + $0x524] ss:$8 sps:$4 sm:$0xff]   ;;  %v4999_v27 = vld [vmem:[%s5656_s20 + $0x420] ss:$8 sps:$4 sm:$0xff]  }
  0x69   : > { %3570 = vmatprep.subr.bf16.mxu1 %v4922_v28  ;;  %v5002_v28 = vld [vmem:[%s5656_s20 + $0x520] ss:$8 sps:$4 sm:$0xff]  }
  0x6b   : > { %3530 = vmatpush1.bf16.msra.mxu0 %v4917_v29  ;;  %v5007_v29 = vld [vmem:[%s5656_s20 + $0x434] ss:$8 sps:$4 sm:$0xff]  }
  0x6c   : > { %3571 = vmatpush1.bf16.msra.mxu1 %v4920_v30  ;;  %3531 = vmatprep.subr.bf16.mxu0 %v4925_v31  ;;  %v5010_v30 = vld [vmem:[%s5656_s20 + $0x534] ss:$8 sps:$4 sm:$0xff]   ;;  %v5005_v31 = vld [vmem:[%s5656_s20 + $0x430] ss:$8 sps:$4 sm:$0xff]  }
  0x6d   : > { %3572 = vmatprep.subr.bf16.mxu1 %v4928_v32  ;;  %v5008_v32 = vld [vmem:[%s5656_s20 + $0x530] ss:$8 sps:$4 sm:$0xff]  }
  0x6f   : > { %3532 = vmatpush1.bf16.msra.mxu0 %v4923_v35  ;;  %v5011_v35 = vld [vmem:[%s5656_s20 + $0x440] ss:$8 sps:$4 sm:$0xff]  }
  0x70   : > { %3573 = vmatpush1.bf16.msra.mxu1 %v4926_v36  ;;  %3533 = vmatprep.subr.bf16.mxu0 %v4931_v39  ;;  %v5014_v36 = vld [vmem:[%s5656_s20 + $0x540] ss:$8 sps:$4 sm:$0xff]   ;;  %v5017_v39 = vld [vmem:[%s5656_s20 + $0x450] ss:$8 sps:$4 sm:$0xff]  }
  0x71   : > { %3574 = vmatprep.subr.bf16.mxu1 %v4934_v40  ;;  %v5020_v40 = vld [vmem:[%s5656_s20 + $0x550] ss:$8 sps:$4 sm:$0xff]  }
  0x73   : > { %3534 = vmatpush1.bf16.msra.mxu0 %v4929_v41  ;;  %v5025_v41 = vld [vmem:[%s5656_s20 + $0x464] ss:$8 sps:$4 sm:$0xff]  }
  0x74   : > { %3575 = vmatpush1.bf16.msra.mxu1 %v4932_v42  ;;  %3535 = vmatprep.subr.bf16.mxu0 %v4937_v43  ;;  %v5028_v42 = vld [vmem:[%s5656_s20 + $0x564] ss:$8 sps:$4 sm:$0xff]   ;;  %v5023_v43 = vld [vmem:[%s5656_s20 + $0x460] ss:$8 sps:$4 sm:$0xff]  }
  0x75   : > { %3576 = vmatprep.subr.bf16.mxu1 %v4940_v44  ;;  %v5026_v44 = vld [vmem:[%s5656_s20 + $0x560] ss:$8 sps:$4 sm:$0xff]  }
  0x77   : > { %3536 = vmatpush1.bf16.msra.mxu0 %v4935_v45  ;;  %v5031_v45 = vld [vmem:[%s5656_s20 + $0x474] ss:$8 sps:$4 sm:$0xff]  }
  0x78   : > { %3577 = vmatpush1.bf16.msra.mxu1 %v4938_v46  ;;  %3537 = vmatprep.subr.bf16.mxu0 %v4943_v47  ;;  %v5034_v46 = vld [vmem:[%s5656_s20 + $0x574] ss:$8 sps:$4 sm:$0xff]   ;;  %v5029_v47 = vld [vmem:[%s5656_s20 + $0x470] ss:$8 sps:$4 sm:$0xff]  }
  0x79   : > { %3578 = vmatprep.subr.bf16.mxu1 %v4946_v48  ;;  %v5032_v48 = vld [vmem:[%s5656_s20 + $0x570] ss:$8 sps:$4 sm:$0xff]  }
  0x7b   : > { %3538 = vmatpush1.bf16.msra.mxu0 %v4941_v49  ;;  %v5037_v49 = vld [vmem:[%s5656_s20 + $0x484] ss:$8 sps:$4 sm:$0xff]  }
  0x7c   : > { %3579 = vmatpush1.bf16.msra.mxu1 %v4944_v50  ;;  %3539 = vmatprep.subr.bf16.mxu0 %v4949_v51  ;;  %v5040_v50 = vld [vmem:[%s5656_s20 + $0x584] ss:$8 sps:$4 sm:$0xff]   ;;  %v5035_v51 = vld [vmem:[%s5656_s20 + $0x480] ss:$8 sps:$4 sm:$0xff]  }
  0x7d   : > { %3580 = vmatprep.subr.bf16.mxu1 %v4952_v52  ;;  %v5038_v52 = vld [vmem:[%s5656_s20 + $0x580] ss:$8 sps:$4 sm:$0xff]  }
  0x7f   : > { %3540 = vmatpush1.bf16.msra.mxu0 %v4947_v53  ;;  %v5043_v53 = vld [vmem:[%s5656_s20 + $0x494] ss:$8 sps:$4 sm:$0xff]  }
  0x80   : > { %3581 = vmatpush1.bf16.msra.mxu1 %v4950_v54  ;;  %3541 = vmatprep.subr.bf16.mxu0 %v4955_v55  ;;  %v5046_v54 = vld [vmem:[%s5656_s20 + $0x594] ss:$8 sps:$4 sm:$0xff]   ;;  %v5041_v55 = vld [vmem:[%s5656_s20 + $0x490] ss:$8 sps:$4 sm:$0xff]  }
  0x81   : > { %3582 = vmatprep.subr.bf16.mxu1 %v4958_v56  ;;  %v5044_v56 = vld [vmem:[%s5656_s20 + $0x590] ss:$8 sps:$4 sm:$0xff]  }
  0x83   : > { %3542 = vmatpush1.bf16.msra.mxu0 %v4953_v57  ;;  %v5049_v57 = vld [vmem:[%s5656_s20 + $0x4a4] ss:$8 sps:$4 sm:$0xff]  }
  0x84   : > { %3583 = vmatpush1.bf16.msra.mxu1 %v4956_v58  ;;  %3543 = vmatprep.subr.bf16.mxu0 %v4961_v59  ;;  %v5052_v58 = vld [vmem:[%s5656_s20 + $0x5a4] ss:$8 sps:$4 sm:$0xff]   ;;  %v5047_v59 = vld [vmem:[%s5656_s20 + $0x4a0] ss:$8 sps:$4 sm:$0xff]  }
  0x85   : > { %3584 = vmatprep.subr.bf16.mxu1 %v4964_v60  ;;  %v5050_v60 = vld [vmem:[%s5656_s20 + $0x5a0] ss:$8 sps:$4 sm:$0xff]  }
  0x87   : > { %3544 = vmatpush1.bf16.msra.mxu0 %v4959_v61  ;;  %v5055_v61 = vld [vmem:[%s5656_s20 + $0x4b4] ss:$8 sps:$4 sm:$0xff]  }
  0x88   : > { %3585 = vmatpush1.bf16.msra.mxu1 %v4962_v62  ;;  %3545 = vmatprep.subr.bf16.mxu0 %v4967_v63  ;;  %v5058_v62 = vld [vmem:[%s5656_s20 + $0x5b4] ss:$8 sps:$4 sm:$0xff]   ;;  %v5053_v63 = vld [vmem:[%s5656_s20 + $0x4b0] ss:$8 sps:$4 sm:$0xff]  }
  0x89   : > { %3586 = vmatprep.subr.bf16.mxu1 %v4970_v0  ;;  %v5056_v0 = vld [vmem:[%s5656_s20 + $0x5b0] ss:$8 sps:$4 sm:$0xff]  }
  0x8b   : > { %3546 = vmatpush1.bf16.msra.mxu0 %v4965_v1  ;;  %v5061_v1 = vld [vmem:[%s5656_s20 + $0x4c4] ss:$8 sps:$4 sm:$0xff]  }
  0x8c   : > { %3587 = vmatpush1.bf16.msra.mxu1 %v4968_v2  ;;  %3547 = vmatprep.subr.bf16.mxu0 %v4973_v3  ;;  %v5064_v2 = vld [vmem:[%s5656_s20 + $0x5c4] ss:$8 sps:$4 sm:$0xff]   ;;  %v5059_v3 = vld [vmem:[%s5656_s20 + $0x4c0] ss:$8 sps:$4 sm:$0xff]  }
  0x8d   : > { %3588 = vmatprep.subr.bf16.mxu1 %v4976_v4  ;;  %v5062_v4 = vld [vmem:[%s5656_s20 + $0x5c0] ss:$8 sps:$4 sm:$0xff]  }
  0x8f   : > { %3548 = vmatpush1.bf16.msra.mxu0 %v4971_v5  ;;  %v5067_v5 = vld [vmem:[%s5656_s20 + $0x4d4] ss:$8 sps:$4 sm:$0xff]  }
  0x90   : > { %3589 = vmatpush1.bf16.msra.mxu1 %v4974_v6  ;;  %3549 = vmatprep.subr.bf16.mxu0 %v4979_v7  ;;  %v5070_v6 = vld [vmem:[%s5656_s20 + $0x5d4] ss:$8 sps:$4 sm:$0xff]   ;;  %v5065_v7 = vld [vmem:[%s5656_s20 + $0x4d0] ss:$8 sps:$4 sm:$0xff]  }
  0x91   : > { %3590 = vmatprep.subr.bf16.mxu1 %v4982_v8  ;;  %v5068_v8 = vld [vmem:[%s5656_s20 + $0x5d0] ss:$8 sps:$4 sm:$0xff]  }
  0x93   : > { %3550 = vmatpush1.bf16.msra.mxu0 %v4977_v9  ;;  %v5073_v9 = vld [vmem:[%s5656_s20 + $0x4e4] ss:$8 sps:$4 sm:$0xff]  }
  0x94   : > { %3591 = vmatpush1.bf16.msra.mxu1 %v4980_v10  ;;  %3601 = vmatprep.subr.bf16.mxu0 %v4989_v11  ;;  %v5076_v10 = vld [vmem:[%s5656_s20 + $0x5e4] ss:$8 sps:$4 sm:$0xff]   ;;  %v5071_v11 = vld [vmem:[%s5656_s20 + $0x4e0] ss:$8 sps:$4 sm:$0xff]  }
  0x95   : > { %3642 = vmatprep.subr.bf16.mxu1 %v4992_v12  ;;  %v5074_v12 = vld [vmem:[%s5656_s20 + $0x5e0] ss:$8 sps:$4 sm:$0xff]  }
  0x96   : > { %3552 = vmatmul.mubr.bf16.vlgmr.msra.gmra.mrb[4].mxu0 %v4216_v13  ;;  %v5079_v13 = vld [vmem:[%s5656_s20 + $0x4f4] ss:$8 sps:$4 sm:$0xff]  }
  0x97   : > { %3593 = vmatmul.mubr.bf16.vlgmr.msra.gmra.mrb[4].mxu1 %v4218_v14  ;;  %3602 = vmatpush1.bf16.msra.mxu0 %v4987_v15  ;;  %v5082_v14 = vld [vmem:[%s5656_s20 + $0x5f4] ss:$8 sps:$4 sm:$0xff]   ;;  %v5077_v15 = vld [vmem:[%s5656_s20 + $0x4f0] ss:$8 sps:$4 sm:$0xff]  }
  0x98   : > { %3643 = vmatpush1.bf16.msra.mxu1 %v4990_v16  ;;  %3603 = vmatprep.subr.bf16.mxu0 %v4995_v17  ;;  %v5080_v16 = vld [vmem:[%s5656_s20 + $0x5f0] ss:$8 sps:$4 sm:$0xff]   ;;  %v5089_v17 = vld [vmem:[%s5656_s20 + $0x604] ss:$8 sps:$4 sm:$0xff]  }
  0x99   : > { %3644 = vmatprep.subr.bf16.mxu1 %v4998_v18  ;;  %3633 = vmatprep.mubr.bf16.mxu0 %v4221_v21  ;;  %v5092_v18 = vld [vmem:[%s5656_s20 + $0x704] ss:$8 sps:$4 sm:$0xff]   ;;  %v5087_v21 = vld [vmem:[%s5656_s20 + $0x600] ss:$8 sps:$4 sm:$0xff]  }
  0x9a   : > { %3674 = vmatprep.mubr.bf16.mxu1 %v4223_v22  ;;  %v5090_v22 = vld [vmem:[%s5656_s20 + $0x700] ss:$8 sps:$4 sm:$0xff]  }
  0x9b   : > { %3604 = vmatpush1.bf16.msra.mxu0 %v4993_v23  ;;  %v4220_v23 = vcombine.low %v5816_v19, %v5816_v19 }
  0x9c   : > { %3645 = vmatpush1.bf16.msra.mxu1 %v4996_v24  ;;  %3605 = vmatprep.subr.bf16.mxu0 %v5001_v25  ;;  %v4222_v24 = vcombine.low %v5819_v20, %v5819_v20  ;;  %v5892_v25 = vld [vmem:[%s5707_s26 + $0x30] sm:$0xff] }
  0x9d   : > { %3646 = vmatprep.subr.bf16.mxu1 %v5004_v26  ;;  %v5895_v26 = vld [vmem:[%s5707_s26 + $0x38] sm:$0xff]  ;;  %v4225_v19 = vcombine.high %v5892_v25, %v5892_v25 }
  0x9e   : > { %v4227_v20 = vcombine.high %v5895_v26, %v5895_v26 }
  0x9f   : > { %3606 = vmatpush1.bf16.msra.mxu0 %v4999_v27  ;;  %v5095_v27 = vld [vmem:[%s5656_s20 + $0x614] ss:$8 sps:$4 sm:$0xff]  }
  0xa0   : > { %3647 = vmatpush1.bf16.msra.mxu1 %v5002_v28  ;;  %3607 = vmatprep.subr.bf16.mxu0 %v5007_v29  ;;  %v5098_v28 = vld [vmem:[%s5656_s20 + $0x714] ss:$8 sps:$4 sm:$0xff]   ;;  %v5093_v29 = vld [vmem:[%s5656_s20 + $0x610] ss:$8 sps:$4 sm:$0xff]  }
  0xa1   : > { %3648 = vmatprep.subr.bf16.mxu1 %v5010_v30  ;;  %v5096_v30 = vld [vmem:[%s5656_s20 + $0x710] ss:$8 sps:$4 sm:$0xff]  }
  0xa3   : > { %3608 = vmatpush1.bf16.msra.mxu0 %v5005_v31  ;;  %v5101_v31 = vld [vmem:[%s5656_s20 + $0x624] ss:$8 sps:$4 sm:$0xff]  }
  0xa4   : > { %3649 = vmatpush1.bf16.msra.mxu1 %v5008_v32  ;;  %3609 = vmatprep.subr.bf16.mxu0 %v5013_v33  ;;  %v5104_v32 = vld [vmem:[%s5656_s20 + $0x724] ss:$8 sps:$4 sm:$0xff]   ;;  %v5099_v33 = vld [vmem:[%s5656_s20 + $0x620] ss:$8 sps:$4 sm:$0xff]  }
  0xa5   : > { %3650 = vmatprep.subr.bf16.mxu1 %v5016_v34  ;;  %v5102_v34 = vld [vmem:[%s5656_s20 + $0x720] ss:$8 sps:$4 sm:$0xff]  }
  0xa7   : > { %3610 = vmatpush1.bf16.msra.mxu0 %v5011_v35  ;;  %v5107_v35 = vld [vmem:[%s5656_s20 + $0x634] ss:$8 sps:$4 sm:$0xff]  }
  0xa8   : > { %3651 = vmatpush1.bf16.msra.mxu1 %v5014_v36  ;;  %3611 = vmatprep.subr.bf16.mxu0 %v5019_v37  ;;  %v5110_v36 = vld [vmem:[%s5656_s20 + $0x734] ss:$8 sps:$4 sm:$0xff]   ;;  %v5105_v37 = vld [vmem:[%s5656_s20 + $0x630] ss:$8 sps:$4 sm:$0xff]  }
  0xa9   : > { %3652 = vmatprep.subr.bf16.mxu1 %v5022_v38  ;;  %v5108_v38 = vld [vmem:[%s5656_s20 + $0x730] ss:$8 sps:$4 sm:$0xff]  }
  0xab   : > { %3612 = vmatpush1.bf16.msra.mxu0 %v5017_v39  ;;  %v5113_v39 = vld [vmem:[%s5656_s20 + $0x644] ss:$8 sps:$4 sm:$0xff]  }
  0xac   : > { %3653 = vmatpush1.bf16.msra.mxu1 %v5020_v40  ;;  %3613 = vmatprep.subr.bf16.mxu0 %v5025_v41  ;;  %v5116_v40 = vld [vmem:[%s5656_s20 + $0x744] ss:$8 sps:$4 sm:$0xff]   ;;  %v5111_v41 = vld [vmem:[%s5656_s20 + $0x640] ss:$8 sps:$4 sm:$0xff]  }
  0xad   : > { %3654 = vmatprep.subr.bf16.mxu1 %v5028_v42  ;;  %v5114_v42 = vld [vmem:[%s5656_s20 + $0x740] ss:$8 sps:$4 sm:$0xff]  }
  0xaf   : > { %3614 = vmatpush1.bf16.msra.mxu0 %v5023_v43  ;;  %v5119_v43 = vld [vmem:[%s5656_s20 + $0x654] ss:$8 sps:$4 sm:$0xff]  }
  0xb0   : > { %3655 = vmatpush1.bf16.msra.mxu1 %v5026_v44  ;;  %3615 = vmatprep.subr.bf16.mxu0 %v5031_v45  ;;  %v5122_v44 = vld [vmem:[%s5656_s20 + $0x754] ss:$8 sps:$4 sm:$0xff]   ;;  %v5117_v45 = vld [vmem:[%s5656_s20 + $0x650] ss:$8 sps:$4 sm:$0xff]  }
  0xb1   : > { %3656 = vmatprep.subr.bf16.mxu1 %v5034_v46  ;;  %v5120_v46 = vld [vmem:[%s5656_s20 + $0x750] ss:$8 sps:$4 sm:$0xff]  }
  0xb3   : > { %3616 = vmatpush1.bf16.msra.mxu0 %v5029_v47  ;;  %v5125_v47 = vld [vmem:[%s5656_s20 + $0x664] ss:$8 sps:$4 sm:$0xff]  }
  0xb4   : > { %3657 = vmatpush1.bf16.msra.mxu1 %v5032_v48  ;;  %3617 = vmatprep.subr.bf16.mxu0 %v5037_v49  ;;  %v5128_v48 = vld [vmem:[%s5656_s20 + $0x764] ss:$8 sps:$4 sm:$0xff]   ;;  %v5123_v49 = vld [vmem:[%s5656_s20 + $0x660] ss:$8 sps:$4 sm:$0xff]  }
  0xb5   : > { %3658 = vmatprep.subr.bf16.mxu1 %v5040_v50  ;;  %v5126_v50 = vld [vmem:[%s5656_s20 + $0x760] ss:$8 sps:$4 sm:$0xff]  }
  0xb7   : > { %3618 = vmatpush1.bf16.msra.mxu0 %v5035_v51  ;;  %v5131_v51 = vld [vmem:[%s5656_s20 + $0x674] ss:$8 sps:$4 sm:$0xff]  }
  0xb8   : > { %3659 = vmatpush1.bf16.msra.mxu1 %v5038_v52  ;;  %3619 = vmatprep.subr.bf16.mxu0 %v5043_v53  ;;  %v5134_v52 = vld [vmem:[%s5656_s20 + $0x774] ss:$8 sps:$4 sm:$0xff]   ;;  %v5129_v53 = vld [vmem:[%s5656_s20 + $0x670] ss:$8 sps:$4 sm:$0xff]  }
  0xb9   : > { %3660 = vmatprep.subr.bf16.mxu1 %v5046_v54  ;;  %v5132_v54 = vld [vmem:[%s5656_s20 + $0x770] ss:$8 sps:$4 sm:$0xff]  }
  0xbb   : > { %3620 = vmatpush1.bf16.msra.mxu0 %v5041_v55  ;;  %v5137_v55 = vld [vmem:[%s5656_s20 + $0x684] ss:$8 sps:$4 sm:$0xff]  }
  0xbc   : > { %3661 = vmatpush1.bf16.msra.mxu1 %v5044_v56  ;;  %3621 = vmatprep.subr.bf16.mxu0 %v5049_v57  ;;  %v5140_v56 = vld [vmem:[%s5656_s20 + $0x784] ss:$8 sps:$4 sm:$0xff]   ;;  %v5135_v57 = vld [vmem:[%s5656_s20 + $0x680] ss:$8 sps:$4 sm:$0xff]  }
  0xbd   : > { %3662 = vmatprep.subr.bf16.mxu1 %v5052_v58  ;;  %v5138_v58 = vld [vmem:[%s5656_s20 + $0x780] ss:$8 sps:$4 sm:$0xff]  }
  0xbf   : > { %3622 = vmatpush1.bf16.msra.mxu0 %v5047_v59  ;;  %v5143_v59 = vld [vmem:[%s5656_s20 + $0x694] ss:$8 sps:$4 sm:$0xff]  }
  0xc0   : > { %3663 = vmatpush1.bf16.msra.mxu1 %v5050_v60  ;;  %3623 = vmatprep.subr.bf16.mxu0 %v5055_v61  ;;  %v5146_v60 = vld [vmem:[%s5656_s20 + $0x794] ss:$8 sps:$4 sm:$0xff]   ;;  %v5141_v61 = vld [vmem:[%s5656_s20 + $0x690] ss:$8 sps:$4 sm:$0xff]  }
  0xc1   : > { %3664 = vmatprep.subr.bf16.mxu1 %v5058_v62  ;;  %v5144_v62 = vld [vmem:[%s5656_s20 + $0x790] ss:$8 sps:$4 sm:$0xff]  }
  0xc3   : > { %3624 = vmatpush1.bf16.msra.mxu0 %v5053_v63  ;;  %v5149_v63 = vld [vmem:[%s5656_s20 + $0x6a4] ss:$8 sps:$4 sm:$0xff]  }
  0xc4   : > { %3665 = vmatpush1.bf16.msra.mxu1 %v5056_v0  ;;  %3625 = vmatprep.subr.bf16.mxu0 %v5061_v1  ;;  %v5152_v0 = vld [vmem:[%s5656_s20 + $0x7a4] ss:$8 sps:$4 sm:$0xff]   ;;  %v5147_v1 = vld [vmem:[%s5656_s20 + $0x6a0] ss:$8 sps:$4 sm:$0xff]  }
  0xc5   : > { %3666 = vmatprep.subr.bf16.mxu1 %v5064_v2  ;;  %v5150_v2 = vld [vmem:[%s5656_s20 + $0x7a0] ss:$8 sps:$4 sm:$0xff]  }
  0xc7   : > { %3626 = vmatpush1.bf16.msra.mxu0 %v5059_v3  ;;  %v5155_v3 = vld [vmem:[%s5656_s20 + $0x6b4] ss:$8 sps:$4 sm:$0xff]  }
  0xc8   : > { %3667 = vmatpush1.bf16.msra.mxu1 %v5062_v4  ;;  %3627 = vmatprep.subr.bf16.mxu0 %v5067_v5  ;;  %v5158_v4 = vld [vmem:[%s5656_s20 + $0x7b4] ss:$8 sps:$4 sm:$0xff]   ;;  %v5153_v5 = vld [vmem:[%s5656_s20 + $0x6b0] ss:$8 sps:$4 sm:$0xff]  }
  0xc9   : > { %3668 = vmatprep.subr.bf16.mxu1 %v5070_v6  ;;  %v5156_v6 = vld [vmem:[%s5656_s20 + $0x7b0] ss:$8 sps:$4 sm:$0xff]  }
  0xcb   : > { %3628 = vmatpush1.bf16.msra.mxu0 %v5065_v7  ;;  %v5161_v7 = vld [vmem:[%s5656_s20 + $0x6c4] ss:$8 sps:$4 sm:$0xff]  }
  0xcc   : > { %3669 = vmatpush1.bf16.msra.mxu1 %v5068_v8  ;;  %3629 = vmatprep.subr.bf16.mxu0 %v5073_v9  ;;  %v5164_v8 = vld [vmem:[%s5656_s20 + $0x7c4] ss:$8 sps:$4 sm:$0xff]   ;;  %v5159_v9 = vld [vmem:[%s5656_s20 + $0x6c0] ss:$8 sps:$4 sm:$0xff]  }
  0xcd   : > { %3670 = vmatprep.subr.bf16.mxu1 %v5076_v10  ;;  %v5162_v10 = vld [vmem:[%s5656_s20 + $0x7c0] ss:$8 sps:$4 sm:$0xff]  }
  0xcf   : > { %3630 = vmatpush1.bf16.msra.mxu0 %v5071_v11  ;;  %v5167_v11 = vld [vmem:[%s5656_s20 + $0x6d4] ss:$8 sps:$4 sm:$0xff]  }
  0xd0   : > { %3671 = vmatpush1.bf16.msra.mxu1 %v5074_v12  ;;  %3631 = vmatprep.subr.bf16.mxu0 %v5079_v13  ;;  %v5170_v12 = vld [vmem:[%s5656_s20 + $0x7d4] ss:$8 sps:$4 sm:$0xff]   ;;  %v5165_v13 = vld [vmem:[%s5656_s20 + $0x6d0] ss:$8 sps:$4 sm:$0xff]  }
  0xd1   : > { %3672 = vmatprep.subr.bf16.mxu1 %v5082_v14  ;;  %v5168_v14 = vld [vmem:[%s5656_s20 + $0x7d0] ss:$8 sps:$4 sm:$0xff]  }
  0xd3   : > { %3632 = vmatpush1.bf16.msra.mxu0 %v5077_v15  ;;  %v5173_v15 = vld [vmem:[%s5656_s20 + $0x6e4] ss:$8 sps:$4 sm:$0xff]  }
  0xd4   : > { %3673 = vmatpush1.bf16.msra.mxu1 %v5080_v16  ;;  %3683 = vmatprep.subr.bf16.mxu0 %v5089_v17  ;;  %v5176_v16 = vld [vmem:[%s5656_s20 + $0x7e4] ss:$8 sps:$4 sm:$0xff]   ;;  %v5171_v17 = vld [vmem:[%s5656_s20 + $0x6e0] ss:$8 sps:$4 sm:$0xff]  }
  0xd5   : > { %3724 = vmatprep.subr.bf16.mxu1 %v5092_v18  ;;  %v5174_v18 = vld [vmem:[%s5656_s20 + $0x7e0] ss:$8 sps:$4 sm:$0xff]  }
  0xd6   : > { %3634 = vmatmul.mubr.bf16.vlgmr.msra.gmra.mrb[8].mxu0 %v4220_v23  ;;  %v5177_v23 = vld [vmem:[%s5656_s20 + $0x6f0] ss:$8 sps:$4 sm:$0xff]  }
  0xd7   : > { %3675 = vmatmul.mubr.bf16.vlgmr.msra.gmra.mrb[8].mxu1 %v4222_v24  ;;  %3684 = vmatpush1.bf16.msra.mxu0 %v5087_v21  ;;  %v5179_v21 = vld [vmem:[%s5656_s20 + $0x6f4] ss:$8 sps:$4 sm:$0xff]   ;;  %v5180_v24 = vld [vmem:[%s5656_s20 + $0x7f0] ss:$8 sps:$4 sm:$0xff]  }
  0xd8   : > { %3725 = vmatpush1.bf16.msra.mxu1 %v5090_v22  ;;  %3685 = vmatprep.subr.bf16.mxu0 %v5095_v27  ;;  %v5182_v22 = vld [vmem:[%s5656_s20 + $0x7f4] ss:$8 sps:$4 sm:$0xff]   ;;  %v5189_v27 = vld [vmem:[%s5656_s20 + $0x804] ss:$8 sps:$4 sm:$0xff]  }
  0xd9   : > { %3726 = vmatprep.subr.bf16.mxu1 %v5098_v28  ;;  %3715 = vmatprep.mubr.bf16.mxu0 %v4225_v19  ;;  %v5192_v28 = vld [vmem:[%s5656_s20 + $0x904] ss:$8 sps:$4 sm:$0xff]  }
  0xda   : > { %3756 = vmatprep.mubr.bf16.mxu1 %v4227_v20  ;;  %v5964_v19 = vld [vmem:[%s5707_s26 + $0x40] sm:$0xff]  ;;  %v4224_v20 = vcombine.low %v5892_v25, %v5892_v25 }
  0xdb   : > { %3686 = vmatpush1.bf16.msra.mxu0 %v5093_v29  ;;  %v4226_v29 = vcombine.low %v5895_v26, %v5895_v26  ;;  %v4229_v25 = vcombine.high %v5964_v19, %v5964_v19 }
  0xdc   : > { %3727 = vmatpush1.bf16.msra.mxu1 %v5096_v30  ;;  %3687 = vmatprep.subr.bf16.mxu0 %v5101_v31  ;;  %v5971_v30 = vld [vmem:[%s5707_s26 + $0x48] sm:$0xff] }
  0xdd   : > { %3728 = vmatprep.subr.bf16.mxu1 %v5104_v32  ;;  %v5187_v31 = vld [vmem:[%s5656_s20 + $0x800] ss:$8 sps:$4 sm:$0xff]   ;;  %v4231_v26 = vcombine.high %v5971_v30, %v5971_v30 }
  0xde   : > { %v5190_v32 = vld [vmem:[%s5656_s20 + $0x900] ss:$8 sps:$4 sm:$0xff]  }
  0xdf   : > { %3688 = vmatpush1.bf16.msra.mxu0 %v5099_v33  ;;  %v5195_v33 = vld [vmem:[%s5656_s20 + $0x814] ss:$8 sps:$4 sm:$0xff]  }
  0xe0   : > { %3729 = vmatpush1.bf16.msra.mxu1 %v5102_v34  ;;  %3689 = vmatprep.subr.bf16.mxu0 %v5107_v35  ;;  %v5198_v34 = vld [vmem:[%s5656_s20 + $0x914] ss:$8 sps:$4 sm:$0xff]   ;;  %v5193_v35 = vld [vmem:[%s5656_s20 + $0x810] ss:$8 sps:$4 sm:$0xff]  }
  0xe1   : > { %3730 = vmatprep.subr.bf16.mxu1 %v5110_v36  ;;  %v5196_v36 = vld [vmem:[%s5656_s20 + $0x910] ss:$8 sps:$4 sm:$0xff]  }
  0xe3   : > { %3690 = vmatpush1.bf16.msra.mxu0 %v5105_v37  ;;  %v5201_v37 = vld [vmem:[%s5656_s20 + $0x824] ss:$8 sps:$4 sm:$0xff]  }
  0xe4   : > { %3731 = vmatpush1.bf16.msra.mxu1 %v5108_v38  ;;  %3691 = vmatprep.subr.bf16.mxu0 %v5113_v39  ;;  %v5204_v38 = vld [vmem:[%s5656_s20 + $0x924] ss:$8 sps:$4 sm:$0xff]   ;;  %v5199_v39 = vld [vmem:[%s5656_s20 + $0x820] ss:$8 sps:$4 sm:$0xff]  }
  0xe5   : > { %3732 = vmatprep.subr.bf16.mxu1 %v5116_v40  ;;  %v5202_v40 = vld [vmem:[%s5656_s20 + $0x920] ss:$8 sps:$4 sm:$0xff]  }
  0xe7   : > { %3692 = vmatpush1.bf16.msra.mxu0 %v5111_v41  ;;  %v5207_v41 = vld [vmem:[%s5656_s20 + $0x834] ss:$8 sps:$4 sm:$0xff]  }
  0xe8   : > { %3733 = vmatpush1.bf16.msra.mxu1 %v5114_v42  ;;  %3693 = vmatprep.subr.bf16.mxu0 %v5119_v43  ;;  %v5210_v42 = vld [vmem:[%s5656_s20 + $0x934] ss:$8 sps:$4 sm:$0xff]   ;;  %v5205_v43 = vld [vmem:[%s5656_s20 + $0x830] ss:$8 sps:$4 sm:$0xff]  }
  0xe9   : > { %3734 = vmatprep.subr.bf16.mxu1 %v5122_v44  ;;  %v5208_v44 = vld [vmem:[%s5656_s20 + $0x930] ss:$8 sps:$4 sm:$0xff]  }
  0xeb   : > { %3694 = vmatpush1.bf16.msra.mxu0 %v5117_v45  ;;  %v5213_v45 = vld [vmem:[%s5656_s20 + $0x844] ss:$8 sps:$4 sm:$0xff]  }
  0xec   : > { %3735 = vmatpush1.bf16.msra.mxu1 %v5120_v46  ;;  %3695 = vmatprep.subr.bf16.mxu0 %v5125_v47  ;;  %v5216_v46 = vld [vmem:[%s5656_s20 + $0x944] ss:$8 sps:$4 sm:$0xff]   ;;  %v5211_v47 = vld [vmem:[%s5656_s20 + $0x840] ss:$8 sps:$4 sm:$0xff]  }
  0xed   : > { %3736 = vmatprep.subr.bf16.mxu1 %v5128_v48  ;;  %v5214_v48 = vld [vmem:[%s5656_s20 + $0x940] ss:$8 sps:$4 sm:$0xff]  }
  0xef   : > { %3696 = vmatpush1.bf16.msra.mxu0 %v5123_v49  ;;  %v5219_v49 = vld [vmem:[%s5656_s20 + $0x854] ss:$8 sps:$4 sm:$0xff]  }
  0xf0   : > { %3737 = vmatpush1.bf16.msra.mxu1 %v5126_v50  ;;  %3697 = vmatprep.subr.bf16.mxu0 %v5131_v51  ;;  %v5222_v50 = vld [vmem:[%s5656_s20 + $0x954] ss:$8 sps:$4 sm:$0xff]   ;;  %v5217_v51 = vld [vmem:[%s5656_s20 + $0x850] ss:$8 sps:$4 sm:$0xff]  }
  0xf1   : > { %3738 = vmatprep.subr.bf16.mxu1 %v5134_v52  ;;  %v5220_v52 = vld [vmem:[%s5656_s20 + $0x950] ss:$8 sps:$4 sm:$0xff]  }
  0xf3   : > { %3698 = vmatpush1.bf16.msra.mxu0 %v5129_v53  ;;  %v5225_v53 = vld [vmem:[%s5656_s20 + $0x864] ss:$8 sps:$4 sm:$0xff]  }
  0xf4   : > { %3739 = vmatpush1.bf16.msra.mxu1 %v5132_v54  ;;  %3699 = vmatprep.subr.bf16.mxu0 %v5137_v55  ;;  %v5228_v54 = vld [vmem:[%s5656_s20 + $0x964] ss:$8 sps:$4 sm:$0xff]  }
  0xf5   : > { %3740 = vmatprep.subr.bf16.mxu1 %v5140_v56 }
  0xf7   : > { %3700 = vmatpush1.bf16.msra.mxu0 %v5135_v57  ;;  %v5223_v57 = vld [vmem:[%s5656_s20 + $0x860] ss:$8 sps:$4 sm:$0xff]  }
  0xf8   : > { %3741 = vmatpush1.bf16.msra.mxu1 %v5138_v58  ;;  %3701 = vmatprep.subr.bf16.mxu0 %v5143_v59  ;;  %v5226_v58 = vld [vmem:[%s5656_s20 + $0x960] ss:$8 sps:$4 sm:$0xff]  }
  0xf9   : > { %3742 = vmatprep.subr.bf16.mxu1 %v5146_v60 }
  0xfb   : > { %3702 = vmatpush1.bf16.msra.mxu0 %v5141_v61 }
  0xfc   : > { %3743 = vmatpush1.bf16.msra.mxu1 %v5144_v62  ;;  %3703 = vmatprep.subr.bf16.mxu0 %v5149_v63 }
  0xfd   : > { %3744 = vmatprep.subr.bf16.mxu1 %v5152_v0 }
  0xff   : > { %3704 = vmatpush1.bf16.msra.mxu0 %v5147_v1 }
 0x100   : > { %3745 = vmatpush1.bf16.msra.mxu1 %v5150_v2  ;;  %3705 = vmatprep.subr.bf16.mxu0 %v5155_v3  ;;  %v5231_v3 = vld [vmem:[%s5656_s20 + $0x874] ss:$8 sps:$4 sm:$0xff]  }
 0x101   : > { %3746 = vmatprep.subr.bf16.mxu1 %v5158_v4  ;;  %v5234_v4 = vld [vmem:[%s5656_s20 + $0x974] ss:$8 sps:$4 sm:$0xff]  }
 0x103   : > { %3706 = vmatpush1.bf16.msra.mxu0 %v5153_v5  ;;  %v5229_v5 = vld [vmem:[%s5656_s20 + $0x870] ss:$8 sps:$4 sm:$0xff]  }
 0x104   : > { %3747 = vmatpush1.bf16.msra.mxu1 %v5156_v6  ;;  %3707 = vmatprep.subr.bf16.mxu0 %v5161_v7  ;;  %v5232_v6 = vld [vmem:[%s5656_s20 + $0x970] ss:$8 sps:$4 sm:$0xff]   ;;  %v5237_v7 = vld [vmem:[%s5656_s20 + $0x884] ss:$8 sps:$4 sm:$0xff]  }
 0x105   : > { %3748 = vmatprep.subr.bf16.mxu1 %v5164_v8  ;;  %v5240_v8 = vld [vmem:[%s5656_s20 + $0x984] ss:$8 sps:$4 sm:$0xff]  }
 0x107   : > { %3708 = vmatpush1.bf16.msra.mxu0 %v5159_v9  ;;  %v5235_v9 = vld [vmem:[%s5656_s20 + $0x880] ss:$8 sps:$4 sm:$0xff]  }
 0x108   : > { %3749 = vmatpush1.bf16.msra.mxu1 %v5162_v10  ;;  %3709 = vmatprep.subr.bf16.mxu0 %v5167_v11  ;;  %v5238_v10 = vld [vmem:[%s5656_s20 + $0x980] ss:$8 sps:$4 sm:$0xff]   ;;  %v5243_v11 = vld [vmem:[%s5656_s20 + $0x894] ss:$8 sps:$4 sm:$0xff]  }
 0x109   : > { %3750 = vmatprep.subr.bf16.mxu1 %v5170_v12  ;;  %v5246_v12 = vld [vmem:[%s5656_s20 + $0x994] ss:$8 sps:$4 sm:$0xff]  }
 0x10b   : > { %3710 = vmatpush1.bf16.msra.mxu0 %v5165_v13  ;;  %v5241_v13 = vld [vmem:[%s5656_s20 + $0x890] ss:$8 sps:$4 sm:$0xff]  }
 0x10c   : > { %3751 = vmatpush1.bf16.msra.mxu1 %v5168_v14  ;;  %3711 = vmatprep.subr.bf16.mxu0 %v5173_v15  ;;  %v5244_v14 = vld [vmem:[%s5656_s20 + $0x990] ss:$8 sps:$4 sm:$0xff]   ;;  %v5249_v15 = vld [vmem:[%s5656_s20 + $0x8a4] ss:$8 sps:$4 sm:$0xff]  }
 0x10d   : > { %3752 = vmatprep.subr.bf16.mxu1 %v5176_v16  ;;  %v5252_v16 = vld [vmem:[%s5656_s20 + $0x9a4] ss:$8 sps:$4 sm:$0xff]  }
 0x10f   : > { %3712 = vmatpush1.bf16.msra.mxu0 %v5171_v17  ;;  %v5247_v17 = vld [vmem:[%s5656_s20 + $0x8a0] ss:$8 sps:$4 sm:$0xff]  }
 0x110   : > { %3753 = vmatpush1.bf16.msra.mxu1 %v5174_v18  ;;  %3713 = vmatprep.subr.bf16.mxu0 %v5179_v21  ;;  %v5250_v18 = vld [vmem:[%s5656_s20 + $0x9a0] ss:$8 sps:$4 sm:$0xff]   ;;  %v5255_v21 = vld [vmem:[%s5656_s20 + $0x8b4] ss:$8 sps:$4 sm:$0xff]  }
 0x111   : > { %3754 = vmatprep.subr.bf16.mxu1 %v5182_v22  ;;  %v5258_v22 = vld [vmem:[%s5656_s20 + $0x9b4] ss:$8 sps:$4 sm:$0xff]  }
 0x113   : > { %3714 = vmatpush1.bf16.msra.mxu0 %v5177_v23  ;;  %v5253_v23 = vld [vmem:[%s5656_s20 + $0x8b0] ss:$8 sps:$4 sm:$0xff]  }
 0x114   : > { %3755 = vmatpush1.bf16.msra.mxu1 %v5180_v24  ;;  %3765 = vmatprep.subr.bf16.mxu0 %v5189_v27  ;;  %v5256_v24 = vld [vmem:[%s5656_s20 + $0x9b0] ss:$8 sps:$4 sm:$0xff]   ;;  %v5261_v27 = vld [vmem:[%s5656_s20 + $0x8c4] ss:$8 sps:$4 sm:$0xff]  }
 0x115   : > { %3806 = vmatprep.subr.bf16.mxu1 %v5192_v28  ;;  %v5264_v28 = vld [vmem:[%s5656_s20 + $0x9c4] ss:$8 sps:$4 sm:$0xff]  }
 0x116   : > { %3716 = vmatmul.mubr.bf16.vlgmr.msra.gmra.mrb[12].mxu0 %v4224_v20  ;;  %v5259_v20 = vld [vmem:[%s5656_s20 + $0x8c0] ss:$8 sps:$4 sm:$0xff]  }
 0x117   : > { %3757 = vmatmul.mubr.bf16.vlgmr.msra.gmra.mrb[12].mxu1 %v4226_v29  ;;  %3766 = vmatpush1.bf16.msra.mxu0 %v5187_v31  ;;  %v5262_v29 = vld [vmem:[%s5656_s20 + $0x9c0] ss:$8 sps:$4 sm:$0xff]   ;;  %v5267_v31 = vld [vmem:[%s5656_s20 + $0x8d4] ss:$8 sps:$4 sm:$0xff]  }
 0x118   : > { %3807 = vmatpush1.bf16.msra.mxu1 %v5190_v32  ;;  %3767 = vmatprep.subr.bf16.mxu0 %v5195_v33  ;;  %v5270_v32 = vld [vmem:[%s5656_s20 + $0x9d4] ss:$8 sps:$4 sm:$0xff]   ;;  %v5265_v33 = vld [vmem:[%s5656_s20 + $0x8d0] ss:$8 sps:$4 sm:$0xff]  }
 0x119   : > { %3808 = vmatprep.subr.bf16.mxu1 %v5198_v34  ;;  %3797 = vmatprep.mubr.bf16.mxu0 %v4229_v25  ;;  %v5268_v34 = vld [vmem:[%s5656_s20 + $0x9d0] ss:$8 sps:$4 sm:$0xff]   ;;  %v5273_v25 = vld [vmem:[%s5656_s20 + $0x8e4] ss:$8 sps:$4 sm:$0xff]  }
 0x11a   : > { %3838 = vmatprep.mubr.bf16.mxu1 %v4231_v26  ;;  %v5276_v26 = vld [vmem:[%s5656_s20 + $0x9e4] ss:$8 sps:$4 sm:$0xff]  }
 0x11b   : > { %3768 = vmatpush1.bf16.msra.mxu0 %v5193_v35  ;;  %v5271_v35 = vld [vmem:[%s5656_s20 + $0x8e0] ss:$8 sps:$4 sm:$0xff]  }
 0x11c   : > { %3809 = vmatpush1.bf16.msra.mxu1 %v5196_v36  ;;  %3769 = vmatprep.subr.bf16.mxu0 %v5201_v37  ;;  %v5274_v36 = vld [vmem:[%s5656_s20 + $0x9e0] ss:$8 sps:$4 sm:$0xff]   ;;  %v5279_v37 = vld [vmem:[%s5656_s20 + $0x8f4] ss:$8 sps:$4 sm:$0xff]  }
 0x11d   : > { %3810 = vmatprep.subr.bf16.mxu1 %v5204_v38  ;;  %v5282_v38 = vld [vmem:[%s5656_s20 + $0x9f4] ss:$8 sps:$4 sm:$0xff]  }
 0x11f   : > { %3770 = vmatpush1.bf16.msra.mxu0 %v5199_v39  ;;  %v5277_v39 = vld [vmem:[%s5656_s20 + $0x8f0] ss:$8 sps:$4 sm:$0xff]  }
 0x120   : > { %3811 = vmatpush1.bf16.msra.mxu1 %v5202_v40  ;;  %3771 = vmatprep.subr.bf16.mxu0 %v5207_v41  ;;  %v5280_v40 = vld [vmem:[%s5656_s20 + $0x9f0] ss:$8 sps:$4 sm:$0xff]   ;;  %v5289_v41 = vld [vmem:[%s5656_s20 + $0xa04] ss:$8 sps:$4 sm:$0xff]  }
 0x121   : > { %3812 = vmatprep.subr.bf16.mxu1 %v5210_v42  ;;  %v5292_v42 = vld [vmem:[%s5656_s20 + $0xb04] ss:$8 sps:$4 sm:$0xff]  }
 0x123   : > { %3772 = vmatpush1.bf16.msra.mxu0 %v5205_v43  ;;  %v5287_v43 = vld [vmem:[%s5656_s20 + $0xa00] ss:$8 sps:$4 sm:$0xff]  }
 0x124   : > { %3813 = vmatpush1.bf16.msra.mxu1 %v5208_v44  ;;  %3773 = vmatprep.subr.bf16.mxu0 %v5213_v45  ;;  %v5290_v44 = vld [vmem:[%s5656_s20 + $0xb00] ss:$8 sps:$4 sm:$0xff]   ;;  %v4228_v45 = vcombine.low %v5964_v19, %v5964_v19 }
 0x125   : > { %3814 = vmatprep.subr.bf16.mxu1 %v5216_v46  ;;  %v4230_v46 = vcombine.low %v5971_v30, %v5971_v30 }
 0x127   : > { %3774 = vmatpush1.bf16.msra.mxu0 %v5211_v47  ;;  %v6052_v47 = vld [vmem:[%s5707_s26 + $0x50] sm:$0xff] }
 0x128   : > { %3815 = vmatpush1.bf16.msra.mxu1 %v5214_v48  ;;  %3775 = vmatprep.subr.bf16.mxu0 %v5219_v49  ;;  %v6055_v48 = vld [vmem:[%s5707_s26 + $0x58] sm:$0xff]  ;;  %v4233_v19 = vcombine.high %v6052_v47, %v6052_v47 }
 0x129   : > { %3816 = vmatprep.subr.bf16.mxu1 %v5222_v50  ;;  %v3471_v55 = vpop.f32.mrb[0].mxu0  ;;  %v5295_v49 = vld [vmem:[%s5656_s20 + $0xa14] ss:$8 sps:$4 sm:$0xff]   ;;  %v4235_v30 = vcombine.high %v6055_v48, %v6055_v48 }
 0x12a   : > { %v3512_v56 = vpop.f32.mrb[0].mxu1  ;;  %v3473_v60 = vpop.f32.mrb[1].mxu0  ;;  %v5298_v50 = vld [vmem:[%s5656_s20 + $0xb14] ss:$8 sps:$4 sm:$0xff]  }
 0x12b   : > { %v6003_v59 = vadd.f32 %v3512_v56, %v3471_v55  ;;  %v3514_v61 = vpop.f32.mrb[1].mxu1  ;;  %v3475_v63 = vpop.f32.mrb[2].mxu0  ;;  %3776 = vmatpush1.bf16.msra.mxu0 %v5217_v51  ;;  %v5293_v51 = vld [vmem:[%s5656_s20 + $0xa10] ss:$8 sps:$4 sm:$0xff]   ;;  %v5299_v55 = vld [vmem:[%s5656_s20 + $0xa20] ss:$8 sps:$4 sm:$0xff]  }
 0x12c   : > { %v6005_v62 = vadd.f32 %v3514_v61, %v3473_v60  ;;  %v3516_v0 = vpop.f32.mrb[2].mxu1  ;;  %3817 = vmatpush1.bf16.msra.mxu1 %v5220_v52  ;;  %v3476_v1 = vpop.f32.mrb[3].mxu0  ;;  %3777 = vmatprep.subr.bf16.mxu0 %v5225_v53  ;;  %v5296_v52 = vld [vmem:[%s5656_s20 + $0xb10] ss:$8 sps:$4 sm:$0xff]   ;;  %v5301_v53 = vld [vmem:[%s5656_s20 + $0xa24] ss:$8 sps:$4 sm:$0xff]  }
 0x12d   : > { %v3517_v2 = vpop.f32.mrb[3].mxu1  ;;  %3818 = vmatprep.subr.bf16.mxu1 %v5228_v54  ;;  %v5304_v54 = vld [vmem:[%s5656_s20 + $0xb24] ss:$8 sps:$4 sm:$0xff]   ;;  %v5302_v56 = vld [vmem:[%s5656_s20 + $0xb20] ss:$8 sps:$4 sm:$0xff]  }
 0x12e   : > { %v5305_v60 = vld [vmem:[%s5656_s20 + $0xa30] ss:$8 sps:$4 sm:$0xff]   ;;  %v5313_v63 = vld [vmem:[%s5656_s20 + $0xa44] ss:$8 sps:$4 sm:$0xff]   ;;  %v5311_v1 = vld [vmem:[%s5656_s20 + $0xa40] ss:$8 sps:$4 sm:$0xff]  }
 0x12f   : > { %3778 = vmatpush1.bf16.msra.mxu0 %v5223_v57  ;;  %v5307_v57 = vld [vmem:[%s5656_s20 + $0xa34] ss:$8 sps:$4 sm:$0xff]   ;;  %v5308_v61 = vld [vmem:[%s5656_s20 + $0xb30] ss:$8 sps:$4 sm:$0xff]   ;;  %v5316_v0 = vld [vmem:[%s5656_s20 + $0xb44] ss:$8 sps:$4 sm:$0xff]  }
 0x130   : > { %3819 = vmatpush1.bf16.msra.mxu1 %v5226_v58  ;;  %3779 = vmatprep.subr.bf16.mxu0 %v5231_v3  ;;  %v5310_v58 = vld [vmem:[%s5656_s20 + $0xb34] ss:$8 sps:$4 sm:$0xff]   ;;  %v5314_v2 = vld [vmem:[%s5656_s20 + $0xb40] ss:$8 sps:$4 sm:$0xff]  }
 0x131   : > { %3820 = vmatprep.subr.bf16.mxu1 %v5234_v4  ;;  %v5319_v3 = vld [vmem:[%s5656_s20 + $0xa54] ss:$8 sps:$4 sm:$0xff]  }
 0x132   : > { %v5322_v4 = vld [vmem:[%s5656_s20 + $0xb54] ss:$8 sps:$4 sm:$0xff]  }
 0x133   : > { %3780 = vmatpush1.bf16.msra.mxu0 %v5229_v5  ;;  %v5317_v5 = vld [vmem:[%s5656_s20 + $0xa50] ss:$8 sps:$4 sm:$0xff]  }
 0x134   : > { %3821 = vmatpush1.bf16.msra.mxu1 %v5232_v6  ;;  %3781 = vmatprep.subr.bf16.mxu0 %v5237_v7  ;;  %v5320_v6 = vld [vmem:[%s5656_s20 + $0xb50] ss:$8 sps:$4 sm:$0xff]   ;;  %v5325_v7 = vld [vmem:[%s5656_s20 + $0xa64] ss:$8 sps:$4 sm:$0xff]  }
 0x135   : > { %3822 = vmatprep.subr.bf16.mxu1 %v5240_v8  ;;  %v5328_v8 = vld [vmem:[%s5656_s20 + $0xb64] ss:$8 sps:$4 sm:$0xff]  }
 0x137   : > { %3782 = vmatpush1.bf16.msra.mxu0 %v5235_v9 }
 0x138   : > { %3823 = vmatpush1.bf16.msra.mxu1 %v5238_v10  ;;  %3783 = vmatprep.subr.bf16.mxu0 %v5243_v11 }
 0x139   : > { %3824 = vmatprep.subr.bf16.mxu1 %v5246_v12 }
 0x13b   : > { %3784 = vmatpush1.bf16.msra.mxu0 %v5241_v13 }
 0x13c   : > { %3825 = vmatpush1.bf16.msra.mxu1 %v5244_v14  ;;  %3785 = vmatprep.subr.bf16.mxu0 %v5249_v15 }
 0x13d   : > { %3826 = vmatprep.subr.bf16.mxu1 %v5252_v16 }
 0x13f   : > { %3786 = vmatpush1.bf16.msra.mxu0 %v5247_v17  ;;  %v5323_v17 = vld [vmem:[%s5656_s20 + $0xa60] ss:$8 sps:$4 sm:$0xff]  }
 0x140   : > { %3827 = vmatpush1.bf16.msra.mxu1 %v5250_v18  ;;  %3787 = vmatprep.subr.bf16.mxu0 %v5255_v21  ;;  %v5326_v18 = vld [vmem:[%s5656_s20 + $0xb60] ss:$8 sps:$4 sm:$0xff]  }
 0x141   : > { %3828 = vmatprep.subr.bf16.mxu1 %v5258_v22 }
 0x143   : > { %3788 = vmatpush1.bf16.msra.mxu0 %v5253_v23 }
 0x144   : > { %3829 = vmatpush1.bf16.msra.mxu1 %v5256_v24  ;;  %3789 = vmatprep.subr.bf16.mxu0 %v5261_v27  ;;  %v5329_v27 = vld [vmem:[%s5656_s20 + $0xa70] ss:$8 sps:$4 sm:$0xff]  }
 0x145   : > { %3830 = vmatprep.subr.bf16.mxu1 %v5264_v28  ;;  %v5332_v28 = vld [vmem:[%s5656_s20 + $0xb70] ss:$8 sps:$4 sm:$0xff]  }
 0x147   : > { %3790 = vmatpush1.bf16.msra.mxu0 %v5259_v20  ;;  %v5337_v20 = vld [vmem:[%s5656_s20 + $0xa84] ss:$8 sps:$4 sm:$0xff]  }
 0x148   : > { %3831 = vmatpush1.bf16.msra.mxu1 %v5262_v29  ;;  %3791 = vmatprep.subr.bf16.mxu0 %v5267_v31  ;;  %v5340_v29 = vld [vmem:[%s5656_s20 + $0xb84] ss:$8 sps:$4 sm:$0xff]   ;;  %v5335_v31 = vld [vmem:[%s5656_s20 + $0xa80] ss:$8 sps:$4 sm:$0xff]  }
 0x149   : > { %3832 = vmatprep.subr.bf16.mxu1 %v5270_v32  ;;  %v5338_v32 = vld [vmem:[%s5656_s20 + $0xb80] ss:$8 sps:$4 sm:$0xff]  }
 0x14b   : > { %3792 = vmatpush1.bf16.msra.mxu0 %v5265_v33  ;;  %v5343_v33 = vld [vmem:[%s5656_s20 + $0xa94] ss:$8 sps:$4 sm:$0xff]  }
 0x14c   : > { %3833 = vmatpush1.bf16.msra.mxu1 %v5268_v34  ;;  %3793 = vmatprep.subr.bf16.mxu0 %v5273_v25  ;;  %v5346_v34 = vld [vmem:[%s5656_s20 + $0xb94] ss:$8 sps:$4 sm:$0xff]   ;;  %v5341_v25 = vld [vmem:[%s5656_s20 + $0xa90] ss:$8 sps:$4 sm:$0xff]  }
 0x14d   : > { %3834 = vmatprep.subr.bf16.mxu1 %v5276_v26  ;;  %v5344_v26 = vld [vmem:[%s5656_s20 + $0xb90] ss:$8 sps:$4 sm:$0xff]  }
 0x14f   : > { %3794 = vmatpush1.bf16.msra.mxu0 %v5271_v35  ;;  %v5349_v35 = vld [vmem:[%s5656_s20 + $0xaa4] ss:$8 sps:$4 sm:$0xff]  }
 0x150   : > { %3835 = vmatpush1.bf16.msra.mxu1 %v5274_v36  ;;  %3795 = vmatprep.subr.bf16.mxu0 %v5279_v37  ;;  %v5352_v36 = vld [vmem:[%s5656_s20 + $0xba4] ss:$8 sps:$4 sm:$0xff]   ;;  %v5347_v37 = vld [vmem:[%s5656_s20 + $0xaa0] ss:$8 sps:$4 sm:$0xff]  }
 0x151   : > { %3836 = vmatprep.subr.bf16.mxu1 %v5282_v38  ;;  %v5350_v38 = vld [vmem:[%s5656_s20 + $0xba0] ss:$8 sps:$4 sm:$0xff]  }
 0x153   : > { %3796 = vmatpush1.bf16.msra.mxu0 %v5277_v39  ;;  %v5355_v39 = vld [vmem:[%s5656_s20 + $0xab4] ss:$8 sps:$4 sm:$0xff]  }
 0x154   : > { %3837 = vmatpush1.bf16.msra.mxu1 %v5280_v40  ;;  %3847 = vmatprep.subr.bf16.mxu0 %v5289_v41  ;;  %v5358_v40 = vld [vmem:[%s5656_s20 + $0xbb4] ss:$8 sps:$4 sm:$0xff]   ;;  %v5353_v41 = vld [vmem:[%s5656_s20 + $0xab0] ss:$8 sps:$4 sm:$0xff]  }
 0x155   : > { %3888 = vmatprep.subr.bf16.mxu1 %v5292_v42  ;;  %v5356_v42 = vld [vmem:[%s5656_s20 + $0xbb0] ss:$8 sps:$4 sm:$0xff]  }
 0x156   : > { %3798 = vmatmul.mubr.bf16.vlgmr.msra.gmra.mrb[16].mxu0 %v4228_v45  ;;  %v5359_v45 = vld [vmem:[%s5656_s20 + $0xac0] ss:$8 sps:$4 sm:$0xff]  }
 0x157   : > { %3839 = vmatmul.mubr.bf16.vlgmr.msra.gmra.mrb[16].mxu1 %v4230_v46  ;;  %3848 = vmatpush1.bf16.msra.mxu0 %v5287_v43  ;;  %v5361_v43 = vld [vmem:[%s5656_s20 + $0xac4] ss:$8 sps:$4 sm:$0xff]   ;;  %v5362_v46 = vld [vmem:[%s5656_s20 + $0xbc0] ss:$8 sps:$4 sm:$0xff]  }
 0x158   : > { %3889 = vmatpush1.bf16.msra.mxu1 %v5290_v44  ;;  %3849 = vmatprep.subr.bf16.mxu0 %v5295_v49  ;;  %v5364_v44 = vld [vmem:[%s5656_s20 + $0xbc4] ss:$8 sps:$4 sm:$0xff]   ;;  %v5367_v49 = vld [vmem:[%s5656_s20 + $0xad4] ss:$8 sps:$4 sm:$0xff]  }
 0x159   : > { %3890 = vmatprep.subr.bf16.mxu1 %v5298_v50  ;;  %3879 = vmatprep.mubr.bf16.mxu0 %v4233_v19  ;;  %v5370_v50 = vld [vmem:[%s5656_s20 + $0xbd4] ss:$8 sps:$4 sm:$0xff]   ;;  %v5365_v19 = vld [vmem:[%s5656_s20 + $0xad0] ss:$8 sps:$4 sm:$0xff]  }
 0x15a   : > { %3920 = vmatprep.mubr.bf16.mxu1 %v4235_v30  ;;  %v5368_v30 = vld [vmem:[%s5656_s20 + $0xbd0] ss:$8 sps:$4 sm:$0xff]  }
 0x15b   : > { %3850 = vmatpush1.bf16.msra.mxu0 %v5293_v51  ;;  %v5373_v51 = vld [vmem:[%s5656_s20 + $0xae4] ss:$8 sps:$4 sm:$0xff]  }
 0x15c   : > { %3891 = vmatpush1.bf16.msra.mxu1 %v5296_v52  ;;  %3851 = vmatprep.subr.bf16.mxu0 %v5301_v53  ;;  %v5376_v52 = vld [vmem:[%s5656_s20 + $0xbe4] ss:$8 sps:$4 sm:$0xff]   ;;  %v5371_v53 = vld [vmem:[%s5656_s20 + $0xae0] ss:$8 sps:$4 sm:$0xff]  }
 0x15d   : > { %3892 = vmatprep.subr.bf16.mxu1 %v5304_v54  ;;  %v5374_v54 = vld [vmem:[%s5656_s20 + $0xbe0] ss:$8 sps:$4 sm:$0xff]  }
 0x15f   : > { %3852 = vmatpush1.bf16.msra.mxu0 %v5299_v55  ;;  %v5379_v55 = vld [vmem:[%s5656_s20 + $0xaf4] ss:$8 sps:$4 sm:$0xff]  }
 0x160   : > { %3893 = vmatpush1.bf16.msra.mxu1 %v5302_v56  ;;  %3853 = vmatprep.subr.bf16.mxu0 %v5307_v57  ;;  %v5382_v56 = vld [vmem:[%s5656_s20 + $0xbf4] ss:$8 sps:$4 sm:$0xff]   ;;  %v5377_v57 = vld [vmem:[%s5656_s20 + $0xaf0] ss:$8 sps:$4 sm:$0xff]  }
 0x161   : > { %3894 = vmatprep.subr.bf16.mxu1 %v5310_v58  ;;  %v5380_v58 = vld [vmem:[%s5656_s20 + $0xbf0] ss:$8 sps:$4 sm:$0xff]  }
 0x163   : > { %3854 = vmatpush1.bf16.msra.mxu0 %v5305_v60  ;;  %v5389_v60 = vld [vmem:[%s5656_s20 + $0xc04] ss:$8 sps:$4 sm:$0xff]  }
 0x164   : > { %3895 = vmatpush1.bf16.msra.mxu1 %v5308_v61  ;;  %3855 = vmatprep.subr.bf16.mxu0 %v5313_v63  ;;  %v5392_v61 = vld [vmem:[%s5656_s20 + $0xd04] ss:$8 sps:$4 sm:$0xff]   ;;  %v4232_v63 = vcombine.low %v6052_v47, %v6052_v47 }
 0x165   : > { %3896 = vmatprep.subr.bf16.mxu1 %v5316_v0  ;;  %v4234_v0 = vcombine.low %v6055_v48, %v6055_v48 }
 0x167   : > { %3856 = vmatpush1.bf16.msra.mxu0 %v5311_v1  ;;  %v6134_v1 = vld [vmem:[%s5707_s26 + $0x60] sm:$0xff] }
 0x168   : > { %3897 = vmatpush1.bf16.msra.mxu1 %v5314_v2  ;;  %3857 = vmatprep.subr.bf16.mxu0 %v5319_v3  ;;  %v6137_v2 = vld [vmem:[%s5707_s26 + $0x68] sm:$0xff]  ;;  %v4237_v47 = vcombine.high %v6134_v1, %v6134_v1 }
 0x169   : > { %3898 = vmatprep.subr.bf16.mxu1 %v5322_v4  ;;  %v3553_v9 = vpop.f32.mrb[4].mxu0  ;;  %v5387_v3 = vld [vmem:[%s5656_s20 + $0xc00] ss:$8 sps:$4 sm:$0xff]   ;;  %v4239_v48 = vcombine.high %v6137_v2, %v6137_v2 }
 0x16a   : > { %v3594_v10 = vpop.f32.mrb[4].mxu1  ;;  %v3554_v11 = vadd.f32 %v3553_v9, %v6003_v59  ;;  %v3555_v12 = vpop.f32.mrb[5].mxu0  ;;  %v5331_v59 = vld [vmem:[%s5656_s20 + $0xa74] ss:$8 sps:$4 sm:$0xff]   ;;  %v5390_v4 = vld [vmem:[%s5656_s20 + $0xd00] ss:$8 sps:$4 sm:$0xff]  }
 0x16b   : > { %v3596_v13 = vpop.f32.mrb[5].mxu1  ;;  %v3556_v14 = vadd.f32 %v3555_v12, %v6005_v62  ;;  %v3557_v15 = vpop.f32.mrb[6].mxu0  ;;  %3858 = vmatpush1.bf16.msra.mxu0 %v5317_v5  ;;  %v5334_v62 = vld [vmem:[%s5656_s20 + $0xb74] ss:$8 sps:$4 sm:$0xff]   ;;  %v5401_v9 = vld [vmem:[%s5656_s20 + $0xc24] ss:$8 sps:$4 sm:$0xff]  }
 0x16c   : > { %v3598_v16 = vpop.f32.mrb[6].mxu1  ;;  %3899 = vmatpush1.bf16.msra.mxu1 %v5320_v6  ;;  %v6087_v21 = vadd.f32 %v3594_v10, %v3554_v11  ;;  %v3558_v22 = vpop.f32.mrb[7].mxu0  ;;  %3859 = vmatprep.subr.bf16.mxu0 %v5325_v7  ;;  %v5395_v5 = vld [vmem:[%s5656_s20 + $0xc14] ss:$8 sps:$4 sm:$0xff]   ;;  %v5393_v7 = vld [vmem:[%s5656_s20 + $0xc10] ss:$8 sps:$4 sm:$0xff]  }
 0x16d   : > { %v3599_v23 = vpop.f32.mrb[7].mxu1  ;;  %3900 = vmatprep.subr.bf16.mxu1 %v5328_v8  ;;  %v6091_v24 = vadd.f32 %v3596_v13, %v3556_v14  ;;  %v5398_v6 = vld [vmem:[%s5656_s20 + $0xd14] ss:$8 sps:$4 sm:$0xff]   ;;  %v5396_v8 = vld [vmem:[%s5656_s20 + $0xd10] ss:$8 sps:$4 sm:$0xff]  }
 0x16e   : > { %v5404_v10 = vld [vmem:[%s5656_s20 + $0xd24] ss:$8 sps:$4 sm:$0xff]   ;;  %v5399_v11 = vld [vmem:[%s5656_s20 + $0xc20] ss:$8 sps:$4 sm:$0xff]   ;;  %v5407_v13 = vld [vmem:[%s5656_s20 + $0xc34] ss:$8 sps:$4 sm:$0xff]  }
 0x16f   : > { %3860 = vmatpush1.bf16.msra.mxu0 %v5323_v17  ;;  %v5402_v12 = vld [vmem:[%s5656_s20 + $0xd20] ss:$8 sps:$4 sm:$0xff]   ;;  %v5410_v14 = vld [vmem:[%s5656_s20 + $0xd34] ss:$8 sps:$4 sm:$0xff]   ;;  %v5405_v15 = vld [vmem:[%s5656_s20 + $0xc30] ss:$8 sps:$4 sm:$0xff]  }
 0x170   : > { %3901 = vmatpush1.bf16.msra.mxu1 %v5326_v18  ;;  %3861 = vmatprep.subr.bf16.mxu0 %v5331_v59  ;;  %v5408_v16 = vld [vmem:[%s5656_s20 + $0xd30] ss:$8 sps:$4 sm:$0xff]   ;;  %v5413_v17 = vld [vmem:[%s5656_s20 + $0xc44] ss:$8 sps:$4 sm:$0xff]   ;;  %v5411_v22 = vld [vmem:[%s5656_s20 + $0xc40] ss:$8 sps:$4 sm:$0xff]  }
 0x171   : > { %3902 = vmatprep.subr.bf16.mxu1 %v5334_v62  ;;  %v5416_v18 = vld [vmem:[%s5656_s20 + $0xd44] ss:$8 sps:$4 sm:$0xff]   ;;  %v5414_v23 = vld [vmem:[%s5656_s20 + $0xd40] ss:$8 sps:$4 sm:$0xff]   ;;  %v5419_v59 = vld [vmem:[%s5656_s20 + $0xc54] ss:$8 sps:$4 sm:$0xff]  }
 0x172   : > { %v5422_v62 = vld [vmem:[%s5656_s20 + $0xd54] ss:$8 sps:$4 sm:$0xff]  }
 0x173   : > { %3862 = vmatpush1.bf16.msra.mxu0 %v5329_v27  ;;  %v5417_v27 = vld [vmem:[%s5656_s20 + $0xc50] ss:$8 sps:$4 sm:$0xff]  }
 0x174   : > { %3903 = vmatpush1.bf16.msra.mxu1 %v5332_v28  ;;  %3863 = vmatprep.subr.bf16.mxu0 %v5337_v20  ;;  %v5420_v28 = vld [vmem:[%s5656_s20 + $0xd50] ss:$8 sps:$4 sm:$0xff]   ;;  %v5425_v20 = vld [vmem:[%s5656_s20 + $0xc64] ss:$8 sps:$4 sm:$0xff]  }
 0x175   : > { %3904 = vmatprep.subr.bf16.mxu1 %v5340_v29  ;;  %v5428_v29 = vld [vmem:[%s5656_s20 + $0xd64] ss:$8 sps:$4 sm:$0xff]  }
 0x177   : > { %3864 = vmatpush1.bf16.msra.mxu0 %v5335_v31 }
 0x178   : > { %3905 = vmatpush1.bf16.msra.mxu1 %v5338_v32  ;;  %3865 = vmatprep.subr.bf16.mxu0 %v5343_v33 }
 0x179   : > { %3906 = vmatprep.subr.bf16.mxu1 %v5346_v34 }
 0x17b   : > { %3866 = vmatpush1.bf16.msra.mxu0 %v5341_v25 }
 0x17c   : > { %3907 = vmatpush1.bf16.msra.mxu1 %v5344_v26  ;;  %3867 = vmatprep.subr.bf16.mxu0 %v5349_v35 }
 0x17d   : > { %3908 = vmatprep.subr.bf16.mxu1 %v5352_v36 }
 0x17f   : > { %3868 = vmatpush1.bf16.msra.mxu0 %v5347_v37  ;;  %v5423_v37 = vld [vmem:[%s5656_s20 + $0xc60] ss:$8 sps:$4 sm:$0xff]  }
 0x180   : > { %3909 = vmatpush1.bf16.msra.mxu1 %v5350_v38  ;;  %3869 = vmatprep.subr.bf16.mxu0 %v5355_v39  ;;  %v5426_v38 = vld [vmem:[%s5656_s20 + $0xd60] ss:$8 sps:$4 sm:$0xff]  }
 0x181   : > { %3910 = vmatprep.subr.bf16.mxu1 %v5358_v40 }
 0x183   : > { %3870 = vmatpush1.bf16.msra.mxu0 %v5353_v41 }
 0x184   : > { %3911 = vmatpush1.bf16.msra.mxu1 %v5356_v42  ;;  %3871 = vmatprep.subr.bf16.mxu0 %v5361_v43  ;;  %v5429_v43 = vld [vmem:[%s5656_s20 + $0xc70] ss:$8 sps:$4 sm:$0xff]  }
 0x185   : > { %3912 = vmatprep.subr.bf16.mxu1 %v5364_v44  ;;  %v5432_v44 = vld [vmem:[%s5656_s20 + $0xd70] ss:$8 sps:$4 sm:$0xff]  }
 0x187   : > { %3872 = vmatpush1.bf16.msra.mxu0 %v5359_v45  ;;  %v5437_v45 = vld [vmem:[%s5656_s20 + $0xc84] ss:$8 sps:$4 sm:$0xff]  }
 0x188   : > { %3913 = vmatpush1.bf16.msra.mxu1 %v5362_v46  ;;  %3873 = vmatprep.subr.bf16.mxu0 %v5367_v49  ;;  %v5440_v46 = vld [vmem:[%s5656_s20 + $0xd84] ss:$8 sps:$4 sm:$0xff]   ;;  %v5435_v49 = vld [vmem:[%s5656_s20 + $0xc80] ss:$8 sps:$4 sm:$0xff]  }
 0x189   : > { %3914 = vmatprep.subr.bf16.mxu1 %v5370_v50  ;;  %v5438_v50 = vld [vmem:[%s5656_s20 + $0xd80] ss:$8 sps:$4 sm:$0xff]  }
 0x18b   : > { %3874 = vmatpush1.bf16.msra.mxu0 %v5365_v19  ;;  %v5443_v19 = vld [vmem:[%s5656_s20 + $0xc94] ss:$8 sps:$4 sm:$0xff]  }
 0x18c   : > { %3915 = vmatpush1.bf16.msra.mxu1 %v5368_v30  ;;  %3875 = vmatprep.subr.bf16.mxu0 %v5373_v51  ;;  %v5446_v30 = vld [vmem:[%s5656_s20 + $0xd94] ss:$8 sps:$4 sm:$0xff]   ;;  %v5441_v51 = vld [vmem:[%s5656_s20 + $0xc90] ss:$8 sps:$4 sm:$0xff]  }
 0x18d   : > { %3916 = vmatprep.subr.bf16.mxu1 %v5376_v52  ;;  %v5444_v52 = vld [vmem:[%s5656_s20 + $0xd90] ss:$8 sps:$4 sm:$0xff]  }
 0x18f   : > { %3876 = vmatpush1.bf16.msra.mxu0 %v5371_v53  ;;  %v5449_v53 = vld [vmem:[%s5656_s20 + $0xca4] ss:$8 sps:$4 sm:$0xff]  }
 0x190   : > { %3917 = vmatpush1.bf16.msra.mxu1 %v5374_v54  ;;  %3877 = vmatprep.subr.bf16.mxu0 %v5379_v55  ;;  %v5452_v54 = vld [vmem:[%s5656_s20 + $0xda4] ss:$8 sps:$4 sm:$0xff]   ;;  %v5447_v55 = vld [vmem:[%s5656_s20 + $0xca0] ss:$8 sps:$4 sm:$0xff]  }
 0x191   : > { %3918 = vmatprep.subr.bf16.mxu1 %v5382_v56  ;;  %v5450_v56 = vld [vmem:[%s5656_s20 + $0xda0] ss:$8 sps:$4 sm:$0xff]  }
 0x193   : > { %3878 = vmatpush1.bf16.msra.mxu0 %v5377_v57  ;;  %v5455_v57 = vld [vmem:[%s5656_s20 + $0xcb4] ss:$8 sps:$4 sm:$0xff]  }
 0x194   : > { %3919 = vmatpush1.bf16.msra.mxu1 %v5380_v58  ;;  %3929 = vmatprep.subr.bf16.mxu0 %v5389_v60  ;;  %v5458_v58 = vld [vmem:[%s5656_s20 + $0xdb4] ss:$8 sps:$4 sm:$0xff]   ;;  %v5453_v60 = vld [vmem:[%s5656_s20 + $0xcb0] ss:$8 sps:$4 sm:$0xff]  }
 0x195   : > { %3970 = vmatprep.subr.bf16.mxu1 %v5392_v61  ;;  %v5456_v61 = vld [vmem:[%s5656_s20 + $0xdb0] ss:$8 sps:$4 sm:$0xff]  }
 0x196   : > { %3880 = vmatmul.mubr.bf16.vlgmr.msra.gmra.mrb[20].mxu0 %v4232_v63  ;;  %v5461_v63 = vld [vmem:[%s5656_s20 + $0xcc4] ss:$8 sps:$4 sm:$0xff]  }
 0x197   : > { %3921 = vmatmul.mubr.bf16.vlgmr.msra.gmra.mrb[20].mxu1 %v4234_v0  ;;  %3930 = vmatpush1.bf16.msra.mxu0 %v5387_v3  ;;  %v5464_v0 = vld [vmem:[%s5656_s20 + $0xdc4] ss:$8 sps:$4 sm:$0xff]   ;;  %v5459_v3 = vld [vmem:[%s5656_s20 + $0xcc0] ss:$8 sps:$4 sm:$0xff]  }
 0x198   : > { %3971 = vmatpush1.bf16.msra.mxu1 %v5390_v4  ;;  %3931 = vmatprep.subr.bf16.mxu0 %v5395_v5  ;;  %v5462_v4 = vld [vmem:[%s5656_s20 + $0xdc0] ss:$8 sps:$4 sm:$0xff]   ;;  %v5467_v5 = vld [vmem:[%s5656_s20 + $0xcd4] ss:$8 sps:$4 sm:$0xff]  }
 0x199   : > { %3972 = vmatprep.subr.bf16.mxu1 %v5398_v6  ;;  %3961 = vmatprep.mubr.bf16.mxu0 %v4237_v47  ;;  %v5470_v6 = vld [vmem:[%s5656_s20 + $0xdd4] ss:$8 sps:$4 sm:$0xff]   ;;  %v5465_v47 = vld [vmem:[%s5656_s20 + $0xcd0] ss:$8 sps:$4 sm:$0xff]  }
 0x19a   : > { %4002 = vmatprep.mubr.bf16.mxu1 %v4239_v48  ;;  %v5468_v48 = vld [vmem:[%s5656_s20 + $0xdd0] ss:$8 sps:$4 sm:$0xff]  }
 0x19b   : > { %3932 = vmatpush1.bf16.msra.mxu0 %v5393_v7  ;;  %v5473_v7 = vld [vmem:[%s5656_s20 + $0xce4] ss:$8 sps:$4 sm:$0xff]  }
 0x19c   : > { %3973 = vmatpush1.bf16.msra.mxu1 %v5396_v8  ;;  %3933 = vmatprep.subr.bf16.mxu0 %v5401_v9  ;;  %v5476_v8 = vld [vmem:[%s5656_s20 + $0xde4] ss:$8 sps:$4 sm:$0xff]   ;;  %v5471_v9 = vld [vmem:[%s5656_s20 + $0xce0] ss:$8 sps:$4 sm:$0xff]  }
 0x19d   : > { %3974 = vmatprep.subr.bf16.mxu1 %v5404_v10  ;;  %v5474_v10 = vld [vmem:[%s5656_s20 + $0xde0] ss:$8 sps:$4 sm:$0xff]  }
 0x19f   : > { %3934 = vmatpush1.bf16.msra.mxu0 %v5399_v11  ;;  %v5479_v11 = vld [vmem:[%s5656_s20 + $0xcf4] ss:$8 sps:$4 sm:$0xff]  }
 0x1a0   : > { %3975 = vmatpush1.bf16.msra.mxu1 %v5402_v12  ;;  %3935 = vmatprep.subr.bf16.mxu0 %v5407_v13  ;;  %v5482_v12 = vld [vmem:[%s5656_s20 + $0xdf4] ss:$8 sps:$4 sm:$0xff]   ;;  %v5477_v13 = vld [vmem:[%s5656_s20 + $0xcf0] ss:$8 sps:$4 sm:$0xff]  }
 0x1a1   : > { %3976 = vmatprep.subr.bf16.mxu1 %v5410_v14  ;;  %v5480_v14 = vld [vmem:[%s5656_s20 + $0xdf0] ss:$8 sps:$4 sm:$0xff]  }
 0x1a3   : > { %3936 = vmatpush1.bf16.msra.mxu0 %v5405_v15  ;;  %v5489_v15 = vld [vmem:[%s5656_s20 + $0xe04] ss:$8 sps:$4 sm:$0xff]  }
 0x1a4   : > { %3977 = vmatpush1.bf16.msra.mxu1 %v5408_v16  ;;  %3937 = vmatprep.subr.bf16.mxu0 %v5413_v17  ;;  %v5492_v16 = vld [vmem:[%s5656_s20 + $0xf04] ss:$8 sps:$4 sm:$0xff]   ;;  %v4236_v17 = vcombine.low %v6134_v1, %v6134_v1 }
 0x1a5   : > { %3978 = vmatprep.subr.bf16.mxu1 %v5416_v18  ;;  %v4238_v18 = vcombine.low %v6137_v2, %v6137_v2 }
 0x1a7   : > { %3938 = vmatpush1.bf16.msra.mxu0 %v5411_v22  ;;  %v6218_v22 = vld [vmem:[%s5707_s26 + $0x70] sm:$0xff] }
 0x1a8   : > { %3979 = vmatpush1.bf16.msra.mxu1 %v5414_v23  ;;  %3939 = vmatprep.subr.bf16.mxu0 %v5419_v59  ;;  %v6221_v23 = vld [vmem:[%s5707_s26 + $0x78] sm:$0xff]  ;;  %v5487_v59 = vld [vmem:[%s5656_s20 + $0xe00] ss:$8 sps:$4 sm:$0xff]   ;;  %v4241_v1 = vcombine.high %v6218_v22, %v6218_v22 }
 0x1a9   : > { %3980 = vmatprep.subr.bf16.mxu1 %v5422_v62  ;;  %v3635_v31 = vpop.f32.mrb[8].mxu0  ;;  %v5490_v62 = vld [vmem:[%s5656_s20 + $0xf00] ss:$8 sps:$4 sm:$0xff]   ;;  %v4243_v2 = vcombine.high %v6221_v23, %v6221_v23 }
 0x1aa   : > { %v3676_v32 = vpop.f32.mrb[8].mxu1  ;;  %v3636_v33 = vadd.f32 %v3635_v31, %v6087_v21  ;;  %v3637_v34 = vpop.f32.mrb[9].mxu0  ;;  %v5431_v21 = vld [vmem:[%s5656_s20 + $0xc74] ss:$8 sps:$4 sm:$0xff]   ;;  %v5501_v31 = vld [vmem:[%s5656_s20 + $0xe24] ss:$8 sps:$4 sm:$0xff]  }
 0x1ab   : > { %v3678_v25 = vpop.f32.mrb[9].mxu1  ;;  %v3638_v26 = vadd.f32 %v3637_v34, %v6091_v24  ;;  %v3639_v35 = vpop.f32.mrb[10].mxu0  ;;  %3940 = vmatpush1.bf16.msra.mxu0 %v5417_v27  ;;  %v5434_v24 = vld [vmem:[%s5656_s20 + $0xd74] ss:$8 sps:$4 sm:$0xff]   ;;  %v5502_v34 = vld [vmem:[%s5656_s20 + $0xf20] ss:$8 sps:$4 sm:$0xff]  }
 0x1ac   : > { %v3680_v36 = vpop.f32.mrb[10].mxu1  ;;  %3981 = vmatpush1.bf16.msra.mxu1 %v5420_v28  ;;  %v6171_v39 = vadd.f32 %v3676_v32, %v3636_v33  ;;  %v3640_v40 = vpop.f32.mrb[11].mxu0  ;;  %3941 = vmatprep.subr.bf16.mxu0 %v5425_v20  ;;  %v5495_v27 = vld [vmem:[%s5656_s20 + $0xe14] ss:$8 sps:$4 sm:$0xff]   ;;  %v5493_v20 = vld [vmem:[%s5656_s20 + $0xe10] ss:$8 sps:$4 sm:$0xff]  }
 0x1ad   : > { %v3681_v41 = vpop.f32.mrb[11].mxu1  ;;  %3982 = vmatprep.subr.bf16.mxu1 %v5428_v29  ;;  %v6175_v42 = vadd.f32 %v3678_v25, %v3638_v26  ;;  %v5498_v28 = vld [vmem:[%s5656_s20 + $0xf14] ss:$8 sps:$4 sm:$0xff]   ;;  %v5496_v29 = vld [vmem:[%s5656_s20 + $0xf10] ss:$8 sps:$4 sm:$0xff]  }
 0x1ae   : > { %v5504_v32 = vld [vmem:[%s5656_s20 + $0xf24] ss:$8 sps:$4 sm:$0xff]   ;;  %v5499_v33 = vld [vmem:[%s5656_s20 + $0xe20] ss:$8 sps:$4 sm:$0xff]   ;;  %v5507_v25 = vld [vmem:[%s5656_s20 + $0xe34] ss:$8 sps:$4 sm:$0xff]  }
 0x1af   : > { %3942 = vmatpush1.bf16.msra.mxu0 %v5423_v37  ;;  %v5510_v26 = vld [vmem:[%s5656_s20 + $0xf34] ss:$8 sps:$4 sm:$0xff]   ;;  %v5505_v35 = vld [vmem:[%s5656_s20 + $0xe30] ss:$8 sps:$4 sm:$0xff]   ;;  %v5513_v37 = vld [vmem:[%s5656_s20 + $0xe44] ss:$8 sps:$4 sm:$0xff]  }
 0x1b0   : > { %3983 = vmatpush1.bf16.msra.mxu1 %v5426_v38  ;;  %3943 = vmatprep.subr.bf16.mxu0 %v5431_v21  ;;  %v5508_v36 = vld [vmem:[%s5656_s20 + $0xf30] ss:$8 sps:$4 sm:$0xff]   ;;  %v5516_v38 = vld [vmem:[%s5656_s20 + $0xf44] ss:$8 sps:$4 sm:$0xff]   ;;  %v5511_v40 = vld [vmem:[%s5656_s20 + $0xe40] ss:$8 sps:$4 sm:$0xff]  }
 0x1b1   : > { %3984 = vmatprep.subr.bf16.mxu1 %v5434_v24  ;;  %v5514_v41 = vld [vmem:[%s5656_s20 + $0xf40] ss:$8 sps:$4 sm:$0xff]   ;;  %v5519_v21 = vld [vmem:[%s5656_s20 + $0xe54] ss:$8 sps:$4 sm:$0xff]  }
 0x1b2   : > { %v5522_v24 = vld [vmem:[%s5656_s20 + $0xf54] ss:$8 sps:$4 sm:$0xff]  }
 0x1b3   : > { %3944 = vmatpush1.bf16.msra.mxu0 %v5429_v43  ;;  %v5517_v43 = vld [vmem:[%s5656_s20 + $0xe50] ss:$8 sps:$4 sm:$0xff]  }
 0x1b4   : > { %3985 = vmatpush1.bf16.msra.mxu1 %v5432_v44  ;;  %3945 = vmatprep.subr.bf16.mxu0 %v5437_v45  ;;  %v5520_v44 = vld [vmem:[%s5656_s20 + $0xf50] ss:$8 sps:$4 sm:$0xff]   ;;  %v5525_v45 = vld [vmem:[%s5656_s20 + $0xe64] ss:$8 sps:$4 sm:$0xff]  }
 0x1b5   : > { %3986 = vmatprep.subr.bf16.mxu1 %v5440_v46  ;;  %v5528_v46 = vld [vmem:[%s5656_s20 + $0xf64] ss:$8 sps:$4 sm:$0xff]  }
 0x1b7   : > { %3946 = vmatpush1.bf16.msra.mxu0 %v5435_v49 }
 0x1b8   : > { %3987 = vmatpush1.bf16.msra.mxu1 %v5438_v50  ;;  %3947 = vmatprep.subr.bf16.mxu0 %v5443_v19 }
 0x1b9   : > { %3988 = vmatprep.subr.bf16.mxu1 %v5446_v30 }
 0x1bb   : > { %3948 = vmatpush1.bf16.msra.mxu0 %v5441_v51 }
 0x1bc   : > { %3989 = vmatpush1.bf16.msra.mxu1 %v5444_v52  ;;  %3949 = vmatprep.subr.bf16.mxu0 %v5449_v53 }
 0x1bd   : > { %3990 = vmatprep.subr.bf16.mxu1 %v5452_v54 }
 0x1bf   : > { %3950 = vmatpush1.bf16.msra.mxu0 %v5447_v55  ;;  %v5523_v55 = vld [vmem:[%s5656_s20 + $0xe60] ss:$8 sps:$4 sm:$0xff]  }
 0x1c0   : > { %3991 = vmatpush1.bf16.msra.mxu1 %v5450_v56  ;;  %3951 = vmatprep.subr.bf16.mxu0 %v5455_v57  ;;  %v5526_v56 = vld [vmem:[%s5656_s20 + $0xf60] ss:$8 sps:$4 sm:$0xff]  }
 0x1c1   : > { %3992 = vmatprep.subr.bf16.mxu1 %v5458_v58 }
 0x1c3   : > { %3952 = vmatpush1.bf16.msra.mxu0 %v5453_v60 }
 0x1c4   : > { %3993 = vmatpush1.bf16.msra.mxu1 %v5456_v61  ;;  %3953 = vmatprep.subr.bf16.mxu0 %v5461_v63  ;;  %v5529_v63 = vld [vmem:[%s5656_s20 + $0xe70] ss:$8 sps:$4 sm:$0xff]  }
 0x1c5   : > { %3994 = vmatprep.subr.bf16.mxu1 %v5464_v0  ;;  %v5532_v0 = vld [vmem:[%s5656_s20 + $0xf70] ss:$8 sps:$4 sm:$0xff]  }
 0x1c7   : > { %3954 = vmatpush1.bf16.msra.mxu0 %v5459_v3  ;;  %v5537_v3 = vld [vmem:[%s5656_s20 + $0xe84] ss:$8 sps:$4 sm:$0xff]  }
 0x1c8   : > { %3995 = vmatpush1.bf16.msra.mxu1 %v5462_v4  ;;  %3955 = vmatprep.subr.bf16.mxu0 %v5467_v5  ;;  %v5540_v4 = vld [vmem:[%s5656_s20 + $0xf84] ss:$8 sps:$4 sm:$0xff]   ;;  %v5535_v5 = vld [vmem:[%s5656_s20 + $0xe80] ss:$8 sps:$4 sm:$0xff]  }
 0x1c9   : > { %3996 = vmatprep.subr.bf16.mxu1 %v5470_v6  ;;  %v5538_v6 = vld [vmem:[%s5656_s20 + $0xf80] ss:$8 sps:$4 sm:$0xff]  }
 0x1cb   : > { %3956 = vmatpush1.bf16.msra.mxu0 %v5465_v47  ;;  %v5543_v47 = vld [vmem:[%s5656_s20 + $0xe94] ss:$8 sps:$4 sm:$0xff]  }
 0x1cc   : > { %3997 = vmatpush1.bf16.msra.mxu1 %v5468_v48  ;;  %3957 = vmatprep.subr.bf16.mxu0 %v5473_v7  ;;  %v5546_v48 = vld [vmem:[%s5656_s20 + $0xf94] ss:$8 sps:$4 sm:$0xff]   ;;  %v5541_v7 = vld [vmem:[%s5656_s20 + $0xe90] ss:$8 sps:$4 sm:$0xff]  }
 0x1cd   : > { %3998 = vmatprep.subr.bf16.mxu1 %v5476_v8  ;;  %v5544_v8 = vld [vmem:[%s5656_s20 + $0xf90] ss:$8 sps:$4 sm:$0xff]  }
 0x1cf   : > { %3958 = vmatpush1.bf16.msra.mxu0 %v5471_v9  ;;  %v5549_v9 = vld [vmem:[%s5656_s20 + $0xea4] ss:$8 sps:$4 sm:$0xff]  }
 0x1d0   : > { %3999 = vmatpush1.bf16.msra.mxu1 %v5474_v10  ;;  %3959 = vmatprep.subr.bf16.mxu0 %v5479_v11  ;;  %v5552_v10 = vld [vmem:[%s5656_s20 + $0xfa4] ss:$8 sps:$4 sm:$0xff]   ;;  %v5547_v11 = vld [vmem:[%s5656_s20 + $0xea0] ss:$8 sps:$4 sm:$0xff]  }
 0x1d1   : > { %4000 = vmatprep.subr.bf16.mxu1 %v5482_v12  ;;  %v5550_v12 = vld [vmem:[%s5656_s20 + $0xfa0] ss:$8 sps:$4 sm:$0xff]  }
 0x1d3   : > { %3960 = vmatpush1.bf16.msra.mxu0 %v5477_v13  ;;  %v5555_v13 = vld [vmem:[%s5656_s20 + $0xeb4] ss:$8 sps:$4 sm:$0xff]  }
 0x1d4   : > { %4001 = vmatpush1.bf16.msra.mxu1 %v5480_v14  ;;  %4011 = vmatprep.subr.bf16.mxu0 %v5489_v15  ;;  %v5558_v14 = vld [vmem:[%s5656_s20 + $0xfb4] ss:$8 sps:$4 sm:$0xff]   ;;  %v5553_v15 = vld [vmem:[%s5656_s20 + $0xeb0] ss:$8 sps:$4 sm:$0xff]  }
 0x1d5   : > { %4052 = vmatprep.subr.bf16.mxu1 %v5492_v16  ;;  %v5556_v16 = vld [vmem:[%s5656_s20 + $0xfb0] ss:$8 sps:$4 sm:$0xff]  }
 0x1d6   : > { %3962 = vmatmul.mubr.bf16.vlgmr.msra.gmra.mrb[24].mxu0 %v4236_v17  ;;  %v5561_v17 = vld [vmem:[%s5656_s20 + $0xec4] ss:$8 sps:$4 sm:$0xff]  }
 0x1d7   : > { %4003 = vmatmul.mubr.bf16.vlgmr.msra.gmra.mrb[24].mxu1 %v4238_v18  ;;  %4012 = vmatpush1.bf16.msra.mxu0 %v5487_v59  ;;  %v5564_v18 = vld [vmem:[%s5656_s20 + $0xfc4] ss:$8 sps:$4 sm:$0xff]   ;;  %v5559_v59 = vld [vmem:[%s5656_s20 + $0xec0] ss:$8 sps:$4 sm:$0xff]  }
 0x1d8   : > { %4053 = vmatpush1.bf16.msra.mxu1 %v5490_v62  ;;  %4013 = vmatprep.subr.bf16.mxu0 %v5495_v27  ;;  %v5562_v62 = vld [vmem:[%s5656_s20 + $0xfc0] ss:$8 sps:$4 sm:$0xff]   ;;  %v5567_v27 = vld [vmem:[%s5656_s20 + $0xed4] ss:$8 sps:$4 sm:$0xff]  }
 0x1d9   : > { %4054 = vmatprep.subr.bf16.mxu1 %v5498_v28  ;;  %4043 = vmatprep.mubr.bf16.mxu0 %v4241_v1  ;;  %v5570_v28 = vld [vmem:[%s5656_s20 + $0xfd4] ss:$8 sps:$4 sm:$0xff]   ;;  %v5565_v1 = vld [vmem:[%s5656_s20 + $0xed0] ss:$8 sps:$4 sm:$0xff]  }
 0x1da   : > { %4084 = vmatprep.mubr.bf16.mxu1 %v4243_v2  ;;  %v5568_v2 = vld [vmem:[%s5656_s20 + $0xfd0] ss:$8 sps:$4 sm:$0xff]  }
 0x1db   : > { %4014 = vmatpush1.bf16.msra.mxu0 %v5493_v20  ;;  %v5573_v20 = vld [vmem:[%s5656_s20 + $0xee4] ss:$8 sps:$4 sm:$0xff]  }
 0x1dc   : > { %4055 = vmatpush1.bf16.msra.mxu1 %v5496_v29  ;;  %4015 = vmatprep.subr.bf16.mxu0 %v5501_v31  ;;  %v5576_v29 = vld [vmem:[%s5656_s20 + $0xfe4] ss:$8 sps:$4 sm:$0xff]   ;;  %v5571_v31 = vld [vmem:[%s5656_s20 + $0xee0] ss:$8 sps:$4 sm:$0xff]  }
 0x1dd   : > { %4056 = vmatprep.subr.bf16.mxu1 %v5504_v32  ;;  %v5574_v32 = vld [vmem:[%s5656_s20 + $0xfe0] ss:$8 sps:$4 sm:$0xff]  }
 0x1df   : > { %4016 = vmatpush1.bf16.msra.mxu0 %v5499_v33  ;;  %v5579_v33 = vld [vmem:[%s5656_s20 + $0xef4] ss:$8 sps:$4 sm:$0xff]  }
 0x1e0   : > { %4057 = vmatpush1.bf16.msra.mxu1 %v5502_v34  ;;  %4017 = vmatprep.subr.bf16.mxu0 %v5507_v25  ;;  %v5582_v34 = vld [vmem:[%s5656_s20 + $0xff4] ss:$8 sps:$4 sm:$0xff]   ;;  %v5577_v25 = vld [vmem:[%s5656_s20 + $0xef0] ss:$8 sps:$4 sm:$0xff]  }
 0x1e1   : > { %4058 = vmatprep.subr.bf16.mxu1 %v5510_v26  ;;  %v5580_v26 = vld [vmem:[%s5656_s20 + $0xff0] ss:$8 sps:$4 sm:$0xff]  }
 0x1e3   : > { %4018 = vmatpush1.bf16.msra.mxu0 %v5505_v35  ;;  %v4240_v35 = vcombine.low %v6218_v22, %v6218_v22 }
 0x1e4   : > { %4059 = vmatpush1.bf16.msra.mxu1 %v5508_v36  ;;  %4019 = vmatprep.subr.bf16.mxu0 %v5513_v37  ;;  %v4242_v36 = vcombine.low %v6221_v23, %v6221_v23 }
 0x1e5   : > { %4060 = vmatprep.subr.bf16.mxu1 %v5516_v38 }
 0x1e7   : > { %4020 = vmatpush1.bf16.msra.mxu0 %v5511_v40 }
 0x1e8   : > { %4061 = vmatpush1.bf16.msra.mxu1 %v5514_v41  ;;  %4021 = vmatprep.subr.bf16.mxu0 %v5519_v21 }
 0x1e9   : > { %4062 = vmatprep.subr.bf16.mxu1 %v5522_v24  ;;  %v3717_v49 = vpop.f32.mrb[12].mxu0 }
 0x1ea   : > { %v3758_v50 = vpop.f32.mrb[12].mxu1  ;;  %v3718_v19 = vadd.f32 %v3717_v49, %v6171_v39  ;;  %v3719_v30 = vpop.f32.mrb[13].mxu0  ;;  %v5531_v39 = vld [vmem:[%s5656_s20 + $0xe74] ss:$8 sps:$4 sm:$0xff]  }
 0x1eb   : > { %v3760_v51 = vpop.f32.mrb[13].mxu1  ;;  %v3720_v52 = vadd.f32 %v3719_v30, %v6175_v42  ;;  %v3721_v53 = vpop.f32.mrb[14].mxu0  ;;  %4022 = vmatpush1.bf16.msra.mxu0 %v5517_v43  ;;  %v5534_v42 = vld [vmem:[%s5656_s20 + $0xf74] ss:$8 sps:$4 sm:$0xff]  }
 0x1ec   : > { %v3762_v54 = vpop.f32.mrb[14].mxu1  ;;  %4063 = vmatpush1.bf16.msra.mxu1 %v5520_v44  ;;  %v6255_v57 = vadd.f32 %v3758_v50, %v3718_v19  ;;  %v3722_v58 = vpop.f32.mrb[15].mxu0  ;;  %4023 = vmatprep.subr.bf16.mxu0 %v5525_v45 }
 0x1ed   : > { %v3763_v60 = vpop.f32.mrb[15].mxu1  ;;  %4064 = vmatprep.subr.bf16.mxu1 %v5528_v46  ;;  %v6259_v61 = vadd.f32 %v3760_v51, %v3720_v52 }
 0x1ef   : > { %4024 = vmatpush1.bf16.msra.mxu0 %v5523_v55 }
 0x1f0   : > { %4065 = vmatpush1.bf16.msra.mxu1 %v5526_v56  ;;  %4025 = vmatprep.subr.bf16.mxu0 %v5531_v39 }
 0x1f1   : > { %4066 = vmatprep.subr.bf16.mxu1 %v5534_v42 }
 0x1f3   : > { %4026 = vmatpush1.bf16.msra.mxu0 %v5529_v63 }
 0x1f4   : > { %4067 = vmatpush1.bf16.msra.mxu1 %v5532_v0  ;;  %4027 = vmatprep.subr.bf16.mxu0 %v5537_v3 }
 0x1f5   : > { %4068 = vmatprep.subr.bf16.mxu1 %v5540_v4 }
 0x1f7   : > { %4028 = vmatpush1.bf16.msra.mxu0 %v5535_v5 }
 0x1f8   : > { %4069 = vmatpush1.bf16.msra.mxu1 %v5538_v6  ;;  %4029 = vmatprep.subr.bf16.mxu0 %v5543_v47 }
 0x1f9   : > { %4070 = vmatprep.subr.bf16.mxu1 %v5546_v48 }
 0x1fb   : > { %4030 = vmatpush1.bf16.msra.mxu0 %v5541_v7 }
 0x1fc   : > { %4071 = vmatpush1.bf16.msra.mxu1 %v5544_v8  ;;  %4031 = vmatprep.subr.bf16.mxu0 %v5549_v9 }
 0x1fd   : > { %4072 = vmatprep.subr.bf16.mxu1 %v5552_v10 }
 0x1ff   : > { %4032 = vmatpush1.bf16.msra.mxu0 %v5547_v11 }
 0x200   : > { %4073 = vmatpush1.bf16.msra.mxu1 %v5550_v12  ;;  %4033 = vmatprep.subr.bf16.mxu0 %v5555_v13  ;;  %v251_v12 = vld [vmem:[#allocation2] sm:$0xff] }
 0x201   : > { %4074 = vmatprep.subr.bf16.mxu1 %v5558_v14 }
 0x203   : > { %4034 = vmatpush1.bf16.msra.mxu0 %v5553_v15 }
 0x204   : > { %4075 = vmatpush1.bf16.msra.mxu1 %v5556_v16  ;;  %4035 = vmatprep.subr.bf16.mxu0 %v5561_v17  ;;  %v252_v17 = vld [vmem:[#allocation2 + $0x8] sm:$0xff] }
 0x205   : > { %4076 = vmatprep.subr.bf16.mxu1 %v5564_v18 }
 0x207   : > { %4036 = vmatpush1.bf16.msra.mxu0 %v5559_v59 }
 0x208   : > { %4077 = vmatpush1.bf16.msra.mxu1 %v5562_v62  ;;  %4037 = vmatprep.subr.bf16.mxu0 %v5567_v27 }
 0x209   : > { %4078 = vmatprep.subr.bf16.mxu1 %v5570_v28 }
 0x20b   : > { %4038 = vmatpush1.bf16.msra.mxu0 %v5565_v1  ;;  %v4105_v1 = vlaneseq (!%p4756_p6) }
 0x20c   : > { %4079 = vmatpush1.bf16.msra.mxu1 %v5568_v2  ;;  %4039 = vmatprep.subr.bf16.mxu0 %v5573_v20  ;;  %v4103_v20 = vld [vmem:[%s6322_s2] sm:$0x3] (!%p4756_p6) }
 0x20d   : > { %4080 = vmatprep.subr.bf16.mxu1 %v5576_v29  ;;  %v4106_v2 = vshrl.u32 (!%p4756_p6), %v4105_v1, 7 }
 0x20f   : > { %4040 = vmatpush1.bf16.msra.mxu0 %v5571_v31  ;;  %v4107_v29 = vsub.s32 (!%p4756_p6), 0, %v4106_v2  ;;  %v4111_v31 = vsub.s32 (!%p4756_p6), 1, %v4106_v2 }
 0x210   : > { %4081 = vmatpush1.bf16.msra.mxu1 %v5574_v32  ;;  %4041 = vmatprep.subr.bf16.mxu0 %v5579_v33 }
 0x211   : > { %4082 = vmatprep.subr.bf16.mxu1 %v5582_v34  ;;  %v4108_v34 = vrot.slane (!%p4756_p6), %v4103_v20, %v4107_v29 }
 0x213   : > { %4042 = vmatpush1.bf16.msra.mxu0 %v5577_v25  ;;  %v4112_v25 = vrot.slane (!%p4756_p6), %v4103_v20, %v4111_v31 }
 0x214   : > { %4083 = vmatpush1.bf16.msra.mxu1 %v5580_v26 }
 0x216   : > { %4044 = vmatmul.mubr.bf16.vlgmr.msra.gmra.mrb[28].mxu0 %v4240_v35 }
 0x217   : > { %4085 = vmatmul.mubr.bf16.vlgmr.msra.gmra.mrb[28].mxu1 %v4242_v36 }
 0x229   : > { %v3799_v37 = vpop.f32.mrb[16].mxu0 }
 0x22a   : > { %v3840_v38 = vpop.f32.mrb[16].mxu1  ;;  %v3800_v40 = vadd.f32 %v3799_v37, %v6255_v57  ;;  %v3801_v41 = vpop.f32.mrb[17].mxu0 }
 0x22b   : > { %v3842_v21 = vpop.f32.mrb[17].mxu1  ;;  %v3802_v24 = vadd.f32 %v3801_v41, %v6259_v61  ;;  %v3803_v43 = vpop.f32.mrb[18].mxu0 }
 0x22c   : > { %v3844_v44 = vpop.f32.mrb[18].mxu1  ;;  %v3841_v45 = vadd.f32 %v3840_v38, %v3800_v40  ;;  %v3804_v46 = vpop.f32.mrb[19].mxu0 }
 0x22d   : > { %v3845_v22 = vpop.f32.mrb[19].mxu1  ;;  %v3843_v49 = vadd.f32 %v3842_v21, %v3802_v24 }
 0x269   : > { %v3881_v50 = vpop.f32.mrb[20].mxu0 }
 0x26a   : > { %v3922_v23 = vpop.f32.mrb[20].mxu1  ;;  %v3882_v19 = vadd.f32 %v3881_v50, %v3841_v45  ;;  %v3883_v30 = vpop.f32.mrb[21].mxu0 }
 0x26b   : > { %v3924_v51 = vpop.f32.mrb[21].mxu1  ;;  %v3884_v52 = vadd.f32 %v3883_v30, %v3843_v49  ;;  %v3885_v53 = vpop.f32.mrb[22].mxu0 }
 0x26c   : > { %v3926_v54 = vpop.f32.mrb[22].mxu1  ;;  %v3923_v55 = vadd.f32 %v3922_v23, %v3882_v19  ;;  %v3886_v56 = vpop.f32.mrb[23].mxu0 }
 0x26d   : > { %v3927_v57 = vpop.f32.mrb[23].mxu1  ;;  %v3925_v58 = vadd.f32 %v3924_v51, %v3884_v52 }
 0x2a9   : > { %v3963_v60 = vpop.f32.mrb[24].mxu0 }
 0x2aa   : > { %v4004_v39 = vpop.f32.mrb[24].mxu1  ;;  %v3964_v42 = vadd.f32 %v3963_v60, %v3923_v55  ;;  %v3965_v61 = vpop.f32.mrb[25].mxu0 }
 0x2ab   : > { %v4006_v63 = vpop.f32.mrb[25].mxu1  ;;  %v3966_v0 = vadd.f32 %v3965_v61, %v3925_v58  ;;  %v3967_v3 = vpop.f32.mrb[26].mxu0 }
 0x2ac   : > { %v4008_v4 = vpop.f32.mrb[26].mxu1  ;;  %v4005_v5 = vadd.f32 %v4004_v39, %v3964_v42  ;;  %v3968_v6 = vpop.f32.mrb[27].mxu0 }
 0x2ad   : > { %v4009_v47 = vpop.f32.mrb[27].mxu1  ;;  %v4007_v48 = vadd.f32 %v4006_v63, %v3966_v0 }
 0x2e9   : > { %v4045_v7 = vpop.f32.mrb[28].mxu0 }
 0x2ea   : > { %v4086_v8 = vpop.f32.mrb[28].mxu1  ;;  %v4046_v9 = vadd.f32 %v4045_v7, %v4005_v5  ;;  %v4047_v10 = vpop.f32.mrb[29].mxu0 }
 0x2eb   : > { %v4088_v11 = vpop.f32.mrb[29].mxu1  ;;  %v4048_v13 = vadd.f32 %v4047_v10, %v4007_v48  ;;  %v4049_v14 = vpop.f32.mrb[30].mxu0  ;;  %4100 = sbr.rel (%p4756_p6) target bundleno = 764 (0x2fc), region = 40 }
 0x2ec   : > { %v4090_v15 = vpop.f32.mrb[30].mxu1  ;;  %v4087_v16 = vadd.f32 %v4086_v8, %v4046_v9  ;;  %v4050_v18 = vpop.f32.mrb[31].mxu0 }
 0x2ed   : > { %v4091_v59 = vpop.f32.mrb[31].mxu1  ;;  %v4089_v62 = vadd.f32 %v4088_v11, %v4048_v13 }
 0x2ee   : > { %v4093_v27 = vadd.f32 %v4087_v16, %v251_v12 }
 0x2ef   : > { %v4094_v28 = vadd.f32 %v4089_v62, %v252_v17 }
 0x2f0   : > { %4095 = vst [vmem:[#allocation2] sm:$0xff] %v4093_v27 }
 0x2f1   : > { %4096 = vst [vmem:[#allocation2 + $0x8] sm:$0xff] %v4094_v28 }
 0x2f7   : > { %v4101_v32 = vld [vmem:[#allocation2] sm:$0xff] }
 0x2f8   : > { %v4102_v33 = vld [vmem:[#allocation2 + $0x8] sm:$0xff]  ;;  %v4115_v26 = vadd.f32 %v4108_v34, %v4101_v32 }
 0x2f9   : > { %v4116_v35 = vadd.f32 %v4112_v25, %v4102_v33 }
 0x2fa   : > { %4117 = vst [vmem:[%s6323_s3] sm:$0xff] %v4115_v26 }
 0x2fb   : > { %4118 = vst [vmem:[%s6323_s3 + $0x8] sm:$0xff] %v4116_v35 }
 0x2fc PF: > { %s13_s14 = sadd.s32 1, %s5609_s14   ;;  %s6324_s12 = smov %s5605_s13 }
 0x2fd   : > { %p10_p7 = scmp.ge.s32.totalorder %s13_s14, 4   ;;  %s6325_s13 = smov %s6327_s15 }
 0x2ff   :  { %12 = sbr.rel (!%p10_p7) target bundleno = 2 (0x2), region = 74 }

</bundles_post_ra>
